<compile_context>
chip_gen: v6e
topology: v6e:2x2x1
jax: 0.10.0
libtpu: 0.0.40
codegen_flags: <defaults>
</compile_context>

<pallas_src>
import jax
import jax.numpy as jnp
from jax.experimental import pallas as pl
from jax.experimental.pallas import tpu as pltpu


# ----------------------------------------------------------------------------
# Kernel
# ----------------------------------------------------------------------------
def _biasfree_layernorm_kernel(x_ref, w_ref, o_ref):
    # x: (tm, C) rows of the flattened input; w: (1, C) f32 scale.
    x = x_ref[...]
    xf = x.astype(jnp.float32)

    # Single-pass statistics, f32 accumulation.  Clamp protects against tiny
    # negative cancellation and against garbage rows in a partial last block.
    s1 = jnp.mean(xf, axis=-1, keepdims=True)
    s2 = jnp.mean(xf * xf, axis=-1, keepdims=True)
    var = jnp.maximum(s2 - s1 * s1, 0.0)
    inv = jax.lax.rsqrt(var + 1e-5)          # EUP rsqrt, (tm, 1) f32

    w = w_ref[...]                           # (1, C) f32
    if x.dtype == jnp.float32:
        o_ref[...] = xf * inv * w
    else:
        # Keep the full-tile multiply in the narrow dtype (native bf16 VALU on
        # v6e/v7x); only the tiny per-row/per-channel scale vectors are
        # rounded, well inside bf16 tolerance.
        o_ref[...] = (x * inv.astype(x.dtype) * w.astype(x.dtype)).astype(o_ref.dtype)


# ----------------------------------------------------------------------------
# Tiling / hardware configuration
# ----------------------------------------------------------------------------
def _round_up(v, m):
    return -(-v // m) * m


def _tpu_config():
    """(physical VMEM bytes, multicore-TC?) with safe fallbacks."""
    vmem_phys = 128 * 1024 * 1024
    multicore = False
    try:
        info = pltpu.get_tpu_info()
        vmem_phys = int(getattr(info, "vmem_capacity_bytes", vmem_phys))
    except Exception:
        pass
    try:
        devs = jax.devices()
        if devs:
            multicore = "v7" in str(devs[0].device_kind).lower()
    except Exception:
        pass
    if vmem_phys <= 80 * 1024 * 1024:        # v7x-like: 64 MiB VMEM, 2 TCs
        multicore = True
    return vmem_phys, multicore


def _choose_tiling(n, c, itemsize):
    """Row-tile size + scoped-VMEM limit.

    Budgets on the *physical* block footprint: lanes are padded to
    round_up(C, 128), blocks are double-buffered for input and output, and the
    kernel holds ~1 f32 full-tile temporary (plus slack)."""
    vmem_phys, multicore = _tpu_config()
    vmem_limit = int(min(96 * 1024 * 1024, (vmem_phys * 3) // 4))

    if n <= 32:
        return n, vmem_limit                  # single full-extent block

    c_pad = _round_up(c, 128)
    per_row = c_pad * (4 * itemsize + 12)     # 2x(in+out) buffers + f32 temps
    block_budget = (vmem_limit * 2) // 3      # headroom under the scoped limit
    tm = block_budget // per_row
    tm = min(tm, 8192 if multicore else 16384, n)
    if multicore and n >= 128:
        # >= 4 grid steps so each of the 2 TensorCores pipelines >= 2 blocks.
        tm = min(tm, _round_up(pl.cdiv(n, 4), 32))
    tm = max(32, (tm // 32) * 32)             # sublane-safe (f32 & packed bf16)
    return tm, vmem_limit


# ----------------------------------------------------------------------------
# Wrapper
# ----------------------------------------------------------------------------
def biasfree_layernorm(x, weight):
    """y = x / sqrt(var(x, -1, unbiased=False) + 1e-5) * weight.

    x: (..., C) any leading dims; weight: (C,).  Output has x's shape/dtype.
    """
    orig_shape = x.shape
    c = orig_shape[-1]
    n = x.size // c
    x2 = x.reshape(n, c)

    itemsize = jnp.dtype(x.dtype).itemsize
    tm, vmem_limit = _choose_tiling(n, c, itemsize)
    grid = (pl.cdiv(n, tm),)

    cost = pl.CostEstimate(
        flops=5 * n * c,                       # 2 reduces + 2 muls + scale
        transcendentals=n,                     # one rsqrt per row
        bytes_accessed=2 * n * c * itemsize + c * 4,
    )

    out = pl.pallas_call(
        _biasfree_layernorm_kernel,
        out_shape=jax.ShapeDtypeStruct((n, c), x.dtype),
        grid=grid,
        in_specs=[
            pl.BlockSpec((tm, c), lambda i: (i, 0)),   # activation rows
            pl.BlockSpec((1, c), lambda i: (0, 0)),    # per-channel scale
        ],
        out_specs=pl.BlockSpec((tm, c), lambda i: (i, 0)),
        compiler_params=pltpu.CompilerParams(
            dimension_semantics=("parallel",),
            vmem_limit_bytes=vmem_limit,
        ),
        cost_estimate=cost,
    )(x2, weight.reshape(1, c).astype(jnp.float32))

    return out.reshape(orig_shape)


# ----------------------------------------------------------------------------
# Reference (pure JAX) for verification
# ----------------------------------------------------------------------------
def _reference(x, weight):
    xf = x.astype(jnp.float32)
    mu = jnp.mean(xf, axis=-1, keepdims=True)
    var = jnp.mean(jnp.square(xf - mu), axis=-1, keepdims=True)
    y = xf / jnp.sqrt(var + 1e-5) * weight.astype(jnp.float32)
    return y.astype(x.dtype)


# ----------------------------------------------------------------------------
if __name__ == "__main__":
    key = jax.random.PRNGKey(0)
    k1, k2, k3 = jax.random.split(key, 3)

    # Restormer-like usage: (B, H*W, C) tokens with C channels normalized.
    B, HW, C = 2, 256, 48
    x = jax.random.normal(k1, (B, HW, C), jnp.float32)
    weight = 1.0 + 0.1 * jax.random.normal(k2, (C,), jnp.float32)

    out = jax.block_until_ready(biasfree_layernorm(x, weight))
    ref = _reference(x, weight)
    assert out.shape == x.shape and out.dtype == x.dtype
    assert jnp.allclose(out, ref, atol=1e-5, rtol=1e-5)
    assert jnp.all(jnp.isfinite(out))

    # bf16 activations (f32 statistics, bf16 final scale inside the kernel).
    xb = x.astype(jnp.bfloat16)
    outb = jax.block_until_ready(biasfree_layernorm(xb, weight))
    refb = _reference(xb, weight)
    assert outb.dtype == jnp.bfloat16
    assert jnp.allclose(outb.astype(jnp.float32), refb.astype(jnp.float32),
                        atol=2e-2, rtol=2e-2)

    # Non-divisible row count: exercises the partial last block (masked
    # writeback, no padding pass).
    xr = jax.random.normal(k3, (3, 100, C), jnp.float32)
    outr = jax.block_until_ready(biasfree_layernorm(xr, weight))
    assert jnp.allclose(outr, _reference(xr, weight), atol=1e-5, rtol=1e-5)
    assert jnp.all(jnp.isfinite(outr))

    print("KERNEL_OK")
</pallas_src>

<mosaic_0001>
module attributes {stable_mosaic.version = 11 : i64} {
  func.func @_biasfree_layernorm_kernel(%arg0: i32, %arg1: memref<512x48xf32, #tpu.memory_space<vmem>>, %arg2: memref<1x48xf32, #tpu.memory_space<vmem>>, %arg3: memref<512x48xf32, #tpu.memory_space<vmem>>) attributes {dimension_semantics = [#tpu.dimension_semantics<parallel>], iteration_bounds = array<i64: 1>, scalar_prefetch = 0 : i64, scratch_operands = 0 : i64, tpu.core_type = #tpu.core_type<tc>, window_params = [{transform_indices = @transform_0, window_bounds = array<i64: 512, 48>}, {pipeline_mode = #tpu.pipeline_mode<synchronous>, transform_indices = @transform_1, window_bounds = array<i64: 1, 48>}, {transform_indices = @transform_2, window_bounds = array<i64: 512, 48>}]} {
    %c0 = arith.constant 0 : index
    %c0_0 = arith.constant 0 : index
    %0 = vector.load %arg1[%c0, %c0_0] : memref<512x48xf32, #tpu.memory_space<vmem>>, vector<512x48xf32>
    %cst = arith.constant dense<0.000000e+00> : vector<512xf32>
    %1 = vector.multi_reduction <add>, %0, %cst [1] : vector<512x48xf32> to vector<512xf32>
    %2 = vector.shape_cast %1 : vector<512xf32> to vector<512x1xf32>
    %cst_1 = arith.constant 4.800000e+01 : f32
    %3 = vector.broadcast %cst_1 : f32 to vector<512x1xf32>
    %4 = arith.divf %2, %3 : vector<512x1xf32>
    %5 = arith.mulf %0, %0 : vector<512x48xf32>
    %cst_2 = arith.constant dense<0.000000e+00> : vector<512xf32>
    %6 = vector.multi_reduction <add>, %5, %cst_2 [1] : vector<512x48xf32> to vector<512xf32>
    %7 = vector.shape_cast %6 : vector<512xf32> to vector<512x1xf32>
    %cst_3 = arith.constant 4.800000e+01 : f32
    %8 = vector.broadcast %cst_3 : f32 to vector<512x1xf32>
    %9 = arith.divf %7, %8 : vector<512x1xf32>
    %10 = arith.mulf %4, %4 : vector<512x1xf32>
    %11 = arith.subf %9, %10 : vector<512x1xf32>
    %cst_4 = arith.constant 0.000000e+00 : f32
    %12 = vector.broadcast %cst_4 : f32 to vector<512x1xf32>
    %13 = arith.maximumf %11, %12 : vector<512x1xf32>
    %cst_5 = arith.constant 9.99999974E-6 : f32
    %14 = vector.broadcast %cst_5 : f32 to vector<512x1xf32>
    %15 = arith.addf %13, %14 : vector<512x1xf32>
    %16 = math.rsqrt %15 : vector<512x1xf32>
    %c0_6 = arith.constant 0 : index
    %c0_7 = arith.constant 0 : index
    %17 = vector.load %arg2[%c0_6, %c0_7] : memref<1x48xf32, #tpu.memory_space<vmem>>, vector<1x48xf32>
    %18 = vector.broadcast %16 : vector<512x1xf32> to vector<512x48xf32>
    %19 = arith.mulf %0, %18 : vector<512x48xf32>
    %20 = vector.broadcast %17 : vector<1x48xf32> to vector<512x48xf32>
    %21 = arith.mulf %19, %20 : vector<512x48xf32>
    %c0_8 = arith.constant 0 : index
    %c0_9 = arith.constant 0 : index
    %22 = vector.load %arg3[%c0_8, %c0_9] : memref<512x48xf32, #tpu.memory_space<vmem>>, vector<512x48xf32>
    tpu.vector_store %arg3[%c0_8, %c0_9], %21 {strides = array<i32>} : memref<512x48xf32, #tpu.memory_space<vmem>>, vector<512x48xf32>,
    return
  }
  func.func @transform_0(%arg0: i32) -> (i32, i32) {
    %c0_i32 = arith.constant 0 : i32
    %c0_i32_0 = arith.constant 0 : i32
    return %arg0, %c0_i32 : i32, i32
  }
  func.func @transform_1(%arg0: i32) -> (i32, i32) {
    %c0_i32 = arith.constant 0 : i32
    %c0_i32_0 = arith.constant 0 : i32
    %c0_i32_1 = arith.constant 0 : i32
    return %c0_i32, %c0_i32_0 : i32, i32
  }
  func.func @transform_2(%arg0: i32) -> (i32, i32) {
    %c0_i32 = arith.constant 0 : i32
    %c0_i32_0 = arith.constant 0 : i32
    return %arg0, %c0_i32 : i32, i32
  }
}

</mosaic_0001>

<bundles_post_ra>
// kernel: tpu_custom_call.1
= control target key start
LH: loop header
LB: loop body
LE: loop exit
PB: predicated region body
PF: predicated region fallthrough
CT: control target
= control target key end

     0   :  { %vm75_vm0 = vcmask 392192   ;;  %s2913_s0 = inlined_call_operand.vmem [shape: f32[512,48], index: 0, kind: input, shape index: {}]   ;;  %s2914_s1 = inlined_call_operand.vmem [shape: f32[1,48], index: 1, kind: input, shape index: {}]   ;;  %s2915_s2 = inlined_call_operand.vmem [shape: f32[512,48], index: 2, kind: output, shape index: {}]  }
   0x1   :  { %v1388_v0 = vld [vmem:[%s2913_s0 + $0x10] sm:$0xff]  ;;  %v1393_v1 = vld [vmem:[%s2913_s0] sm:$0xff]  ;;  %v1398_v2 = vld [vmem:[%s2913_s0 + $0x18] sm:$0xff] }
   0x2   :  { %v82_v3 = vsel %vm75_vm0, %v1388_v0, 0.0  ;;  %v76_v4 = vsel %vm75_vm0, %v1393_v1, 0.0  ;;  %v1407_v5 = vld [vmem:[%s2913_s0 + $0x8] sm:$0xff]  ;;  %v85_v6 = vsel %vm75_vm0, %v1398_v2, 0.0  ;;  %v1421_v9 = vld [vmem:[%s2913_s0 + $0x20] sm:$0xff]  ;;  %v1430_v12 = vld [vmem:[%s2913_s0 + $0x38] sm:$0xff] }
   0x3   :  { %83 = vadd.xlane.f32.xlu1 %v82_v3  ;;  %77 = vadd.xlane.f32.xlu0 %v76_v4  ;;  %v79_v7 = vsel %vm75_vm0, %v1407_v5, 0.0  ;;  %v1416_v8 = vld [vmem:[%s2913_s0 + $0x28] sm:$0xff]  ;;  %v88_v11 = vsel %vm75_vm0, %v1421_v9, 0.0  ;;  %v1435_v13 = vld [vmem:[%s2913_s0 + $0x30] sm:$0xff]  ;;  %v97_v14 = vsel %vm75_vm0, %v1430_v12, 0.0  ;;  %v1449_v17 = vld [vmem:[%s2913_s0 + $0x40] sm:$0xff] }
   0x4   :  { %v91_v10 = vsel %vm75_vm0, %v1416_v8, 0.0  ;;  %v94_v15 = vsel %vm75_vm0, %v1435_v13, 0.0  ;;  %v1444_v16 = vld [vmem:[%s2913_s0 + $0x48] sm:$0xff]  ;;  %v100_v19 = vsel %vm75_vm0, %v1449_v17, 0.0  ;;  %v1458_v20 = vld [vmem:[%s2913_s0 + $0x58] sm:$0xff]  ;;  %v1463_v21 = vld [vmem:[%s2913_s0 + $0x50] sm:$0xff] }
   0x5   :  { %v103_v18 = vsel %vm75_vm0, %v1444_v16, 0.0  ;;  %v109_v22 = vsel %vm75_vm0, %v1458_v20, 0.0  ;;  %v106_v23 = vsel %vm75_vm0, %v1463_v21, 0.0  ;;  %v1472_v24 = vld [vmem:[%s2913_s0 + $0x68] sm:$0xff]  ;;  %v1477_v25 = vld [vmem:[%s2913_s0 + $0x60] sm:$0xff]  ;;  %v1486_v28 = vld [vmem:[%s2913_s0 + $0x78] sm:$0xff] }
   0x6   :  { %v115_v26 = vsel %vm75_vm0, %v1472_v24, 0.0  ;;  %v112_v27 = vsel %vm75_vm0, %v1477_v25, 0.0  ;;  %v1491_v29 = vld [vmem:[%s2913_s0 + $0x70] sm:$0xff]  ;;  %v121_v30 = vsel %vm75_vm0, %v1486_v28, 0.0  ;;  %v1500_v32 = vld [vmem:[%s2913_s0 + $0x88] sm:$0xff]  ;;  %v1505_v33 = vld [vmem:[%s2913_s0 + $0x80] sm:$0xff] }
   0x7   :  { %86 = vadd.xlane.f32.xlu1 %v85_v6  ;;  %80 = vadd.xlane.f32.xlu0 %v79_v7  ;;  %v118_v31 = vsel %vm75_vm0, %v1491_v29, 0.0  ;;  %v127_v34 = vsel %vm75_vm0, %v1500_v32, 0.0  ;;  %v124_v35 = vsel %vm75_vm0, %v1505_v33, 0.0  ;;  %v1514_v36 = vld [vmem:[%s2913_s0 + $0x98] sm:$0xff]  ;;  %v1519_v37 = vld [vmem:[%s2913_s0 + $0x90] sm:$0xff]  ;;  %v1528_v40 = vld [vmem:[%s2913_s0 + $0xa8] sm:$0xff] }
   0x8   :  { %v133_v38 = vsel %vm75_vm0, %v1514_v36, 0.0  ;;  %v130_v39 = vsel %vm75_vm0, %v1519_v37, 0.0  ;;  %v1533_v41 = vld [vmem:[%s2913_s0 + $0xa0] sm:$0xff]  ;;  %v139_v42 = vsel %vm75_vm0, %v1528_v40, 0.0  ;;  %v1542_v44 = vld [vmem:[%s2913_s0 + $0xb8] sm:$0xff]  ;;  %v1547_v45 = vld [vmem:[%s2913_s0 + $0xb0] sm:$0xff] }
   0x9   :  { %v136_v43 = vsel %vm75_vm0, %v1533_v41, 0.0  ;;  %v145_v46 = vsel %vm75_vm0, %v1542_v44, 0.0  ;;  %v142_v47 = vsel %vm75_vm0, %v1547_v45, 0.0  ;;  %v1556_v48 = vld [vmem:[%s2913_s0 + $0xc8] sm:$0xff]  ;;  %v1561_v49 = vld [vmem:[%s2913_s0 + $0xc0] sm:$0xff]  ;;  %v1570_v52 = vld [vmem:[%s2913_s0 + $0xd8] sm:$0xff] }
   0xa   :  { %v151_v50 = vsel %vm75_vm0, %v1556_v48, 0.0  ;;  %v148_v51 = vsel %vm75_vm0, %v1561_v49, 0.0  ;;  %v1575_v53 = vld [vmem:[%s2913_s0 + $0xd0] sm:$0xff]  ;;  %v157_v54 = vsel %vm75_vm0, %v1570_v52, 0.0  ;;  %v1584_v56 = vld [vmem:[%s2913_s0 + $0xe8] sm:$0xff]  ;;  %v1589_v57 = vld [vmem:[%s2913_s0 + $0xe0] sm:$0xff] }
   0xb   :  { %92 = vadd.xlane.f32.xlu1 %v91_v10  ;;  %89 = vadd.xlane.f32.xlu0 %v88_v11  ;;  %v154_v55 = vsel %vm75_vm0, %v1575_v53, 0.0  ;;  %v163_v58 = vsel %vm75_vm0, %v1584_v56, 0.0  ;;  %v160_v59 = vsel %vm75_vm0, %v1589_v57, 0.0  ;;  %v1598_v60 = vld [vmem:[%s2913_s0 + $0xf8] sm:$0xff]  ;;  %v1603_v61 = vld [vmem:[%s2913_s0 + $0xf0] sm:$0xff]  ;;  %v1612_v3 = vld [vmem:[%s2913_s0 + $0x108] sm:$0xff] }
   0xc   :  { %v169_v62 = vsel %vm75_vm0, %v1598_v60, 0.0  ;;  %v166_v63 = vsel %vm75_vm0, %v1603_v61, 0.0  ;;  %v1617_v4 = vld [vmem:[%s2913_s0 + $0x100] sm:$0xff]  ;;  %v175_v6 = vsel %vm75_vm0, %v1612_v3, 0.0  ;;  %v1626_v10 = vld [vmem:[%s2913_s0 + $0x118] sm:$0xff]  ;;  %v1631_v11 = vld [vmem:[%s2913_s0 + $0x110] sm:$0xff] }
   0xd   :  { %v172_v7 = vsel %vm75_vm0, %v1617_v4, 0.0 }
   0xf   :  { %98 = vadd.xlane.f32.xlu1 %v97_v14  ;;  %95 = vadd.xlane.f32.xlu0 %v94_v15  ;;  %v181_v14 = vsel %vm75_vm0, %v1626_v10, 0.0  ;;  %v178_v15 = vsel %vm75_vm0, %v1631_v11, 0.0 }
  0x13   :  { %104 = vadd.xlane.f32.xlu1 %v103_v18  ;;  %101 = vadd.xlane.f32.xlu0 %v100_v19  ;;  %v1640_v18 = vld [vmem:[%s2913_s0 + $0x128] sm:$0xff]  ;;  %v1645_v19 = vld [vmem:[%s2913_s0 + $0x120] sm:$0xff] }
  0x17   :  { %110 = vadd.xlane.f32.xlu1 %v109_v22  ;;  %107 = vadd.xlane.f32.xlu0 %v106_v23  ;;  %v187_v22 = vsel %vm75_vm0, %v1640_v18, 0.0  ;;  %v184_v23 = vsel %vm75_vm0, %v1645_v19, 0.0 }
  0x1b   :  { %116 = vadd.xlane.f32.xlu1 %v115_v26  ;;  %113 = vadd.xlane.f32.xlu0 %v112_v27  ;;  %v1654_v26 = vld [vmem:[%s2913_s0 + $0x138] sm:$0xff]  ;;  %v1659_v27 = vld [vmem:[%s2913_s0 + $0x130] sm:$0xff] }
  0x1f   :  { %122 = vadd.xlane.f32.xlu1 %v121_v30  ;;  %119 = vadd.xlane.f32.xlu0 %v118_v31  ;;  %v193_v30 = vsel %vm75_vm0, %v1654_v26, 0.0  ;;  %v190_v31 = vsel %vm75_vm0, %v1659_v27, 0.0 }
  0x23   :  { %128 = vadd.xlane.f32.xlu1 %v127_v34  ;;  %125 = vadd.xlane.f32.xlu0 %v124_v35  ;;  %v1668_v34 = vld [vmem:[%s2913_s0 + $0x148] sm:$0xff]  ;;  %v1673_v35 = vld [vmem:[%s2913_s0 + $0x140] sm:$0xff] }
  0x27   :  { %134 = vadd.xlane.f32.xlu1 %v133_v38  ;;  %131 = vadd.xlane.f32.xlu0 %v130_v39  ;;  %v199_v38 = vsel %vm75_vm0, %v1668_v34, 0.0  ;;  %v196_v39 = vsel %vm75_vm0, %v1673_v35, 0.0 }
  0x2b   :  { %140 = vadd.xlane.f32.xlu1 %v139_v42  ;;  %137 = vadd.xlane.f32.xlu0 %v136_v43  ;;  %v1682_v42 = vld [vmem:[%s2913_s0 + $0x158] sm:$0xff]  ;;  %v1687_v43 = vld [vmem:[%s2913_s0 + $0x150] sm:$0xff] }
  0x2f   :  { %146 = vadd.xlane.f32.xlu1 %v145_v46  ;;  %143 = vadd.xlane.f32.xlu0 %v142_v47  ;;  %v205_v46 = vsel %vm75_vm0, %v1682_v42, 0.0  ;;  %v202_v47 = vsel %vm75_vm0, %v1687_v43, 0.0 }
  0x33   :  { %152 = vadd.xlane.f32.xlu1 %v151_v50  ;;  %149 = vadd.xlane.f32.xlu0 %v148_v51  ;;  %v1696_v50 = vld [vmem:[%s2913_s0 + $0x168] sm:$0xff]  ;;  %v1701_v51 = vld [vmem:[%s2913_s0 + $0x160] sm:$0xff] }
  0x37   :  { %158 = vadd.xlane.f32.xlu1 %v157_v54  ;;  %155 = vadd.xlane.f32.xlu0 %v154_v55  ;;  %v211_v54 = vsel %vm75_vm0, %v1696_v50, 0.0  ;;  %v208_v55 = vsel %vm75_vm0, %v1701_v51, 0.0 }
  0x3b   :  { %164 = vadd.xlane.f32.xlu1 %v163_v58  ;;  %161 = vadd.xlane.f32.xlu0 %v160_v59  ;;  %v1710_v58 = vld [vmem:[%s2913_s0 + $0x178] sm:$0xff]  ;;  %v1715_v59 = vld [vmem:[%s2913_s0 + $0x170] sm:$0xff] }
  0x3f   :  { %170 = vadd.xlane.f32.xlu1 %v169_v62  ;;  %167 = vadd.xlane.f32.xlu0 %v166_v63  ;;  %v217_v62 = vsel %vm75_vm0, %v1710_v58, 0.0  ;;  %v214_v63 = vsel %vm75_vm0, %v1715_v59, 0.0 }
  0x43   :  { %176 = vadd.xlane.f32.xlu1 %v175_v6  ;;  %173 = vadd.xlane.f32.xlu0 %v172_v7  ;;  %v1724_v6 = vld [vmem:[%s2913_s0 + $0x188] sm:$0xff]  ;;  %v1729_v7 = vld [vmem:[%s2913_s0 + $0x180] sm:$0xff] }
  0x47   :  { %182 = vadd.xlane.f32.xlu1 %v181_v14  ;;  %179 = vadd.xlane.f32.xlu0 %v178_v15  ;;  %v223_v14 = vsel %vm75_vm0, %v1724_v6, 0.0  ;;  %v220_v15 = vsel %vm75_vm0, %v1729_v7, 0.0 }
  0x4b   :  { %188 = vadd.xlane.f32.xlu1 %v187_v22  ;;  %185 = vadd.xlane.f32.xlu0 %v184_v23  ;;  %v1738_v22 = vld [vmem:[%s2913_s0 + $0x198] sm:$0xff]  ;;  %v1743_v23 = vld [vmem:[%s2913_s0 + $0x190] sm:$0xff] }
  0x4f   :  { %194 = vadd.xlane.f32.xlu1 %v193_v30  ;;  %191 = vadd.xlane.f32.xlu0 %v190_v31  ;;  %v229_v30 = vsel %vm75_vm0, %v1738_v22, 0.0  ;;  %v226_v31 = vsel %vm75_vm0, %v1743_v23, 0.0 }
  0x53   :  { %200 = vadd.xlane.f32.xlu1 %v199_v38  ;;  %197 = vadd.xlane.f32.xlu0 %v196_v39  ;;  %v1752_v38 = vld [vmem:[%s2913_s0 + $0x1a8] sm:$0xff]  ;;  %v1757_v39 = vld [vmem:[%s2913_s0 + $0x1a0] sm:$0xff] }
  0x57   :  { %206 = vadd.xlane.f32.xlu1 %v205_v46  ;;  %203 = vadd.xlane.f32.xlu0 %v202_v47  ;;  %v235_v46 = vsel %vm75_vm0, %v1752_v38, 0.0  ;;  %v232_v47 = vsel %vm75_vm0, %v1757_v39, 0.0 }
  0x5b   :  { %212 = vadd.xlane.f32.xlu1 %v211_v54  ;;  %209 = vadd.xlane.f32.xlu0 %v208_v55  ;;  %v1766_v54 = vld [vmem:[%s2913_s0 + $0x1b8] sm:$0xff]  ;;  %v1771_v55 = vld [vmem:[%s2913_s0 + $0x1b0] sm:$0xff] }
  0x5c   :  { %2925 = vst [vmem:[#allocation2_spill] sm:$0xff] %v1766_v54  ;;  %2926 = vst [vmem:[#allocation3_spill] sm:$0xff] %v1771_v55 }
  0x5f   :  { %218 = vadd.xlane.f32.xlu1 %v217_v62  ;;  %215 = vadd.xlane.f32.xlu0 %v214_v63  ;;  %v241_v62 = vsel %vm75_vm0, %v1766_v54, 0.0  ;;  %v238_v63 = vsel %vm75_vm0, %v1771_v55, 0.0 }
  0x63   :  { %224 = vadd.xlane.f32.xlu1 %v223_v14  ;;  %221 = vadd.xlane.f32.xlu0 %v220_v15  ;;  %v1780_v14 = vld [vmem:[%s2913_s0 + $0x1c8] sm:$0xff]  ;;  %v1785_v15 = vld [vmem:[%s2913_s0 + $0x1c0] sm:$0xff] }
  0x64   :  { %2927 = vst [vmem:[#allocation4_spill] sm:$0xff] %v1780_v14  ;;  %2928 = vst [vmem:[#allocation5_spill] sm:$0xff] %v1785_v15 }
  0x67   :  { %230 = vadd.xlane.f32.xlu1 %v229_v30  ;;  %227 = vadd.xlane.f32.xlu0 %v226_v31  ;;  %v247_v30 = vsel %vm75_vm0, %v1780_v14, 0.0  ;;  %v244_v31 = vsel %vm75_vm0, %v1785_v15, 0.0  ;;  %v1808_v15 = vld [vmem:[%s2913_s0 + $0x1e8] sm:$0xff]  ;;  %v1813_v14 = vld [vmem:[%s2913_s0 + $0x1e0] sm:$0xff] }
  0x68   :  { %2931 = vst [vmem:[#allocation8_spill] sm:$0xff] %v1808_v15  ;;  %2932 = vst [vmem:[#allocation9_spill] sm:$0xff] %v1813_v14 }
  0x6b   :  { %236 = vadd.xlane.f32.xlu1 %v235_v46  ;;  %233 = vadd.xlane.f32.xlu0 %v232_v47  ;;  %v1794_v46 = vld [vmem:[%s2913_s0 + $0x1d8] sm:$0xff]  ;;  %v1799_v47 = vld [vmem:[%s2913_s0 + $0x1d0] sm:$0xff] }
  0x6c   :  { %2929 = vst [vmem:[#allocation6_spill] sm:$0xff] %v1794_v46  ;;  %2930 = vst [vmem:[#allocation7_spill] sm:$0xff] %v1799_v47 }
  0x6f   :  { %242 = vadd.xlane.f32.xlu1 %v241_v62  ;;  %239 = vadd.xlane.f32.xlu0 %v238_v63  ;;  %v253_v62 = vsel %vm75_vm0, %v1794_v46, 0.0  ;;  %v250_v63 = vsel %vm75_vm0, %v1799_v47, 0.0  ;;  %v1822_v47 = vld [vmem:[%s2913_s0 + $0x1f8] sm:$0xff]  ;;  %v1827_v46 = vld [vmem:[%s2913_s0 + $0x1f0] sm:$0xff] }
  0x70   :  { %2933 = vst [vmem:[#allocation10_spill] sm:$0xff] %v1827_v46 }
  0x73   :  { %248 = vadd.xlane.f32.xlu1 %v247_v30  ;;  %245 = vadd.xlane.f32.xlu0 %v244_v31  ;;  %v259_v30 = vsel %vm75_vm0, %v1808_v15, 0.0  ;;  %v256_v31 = vsel %vm75_vm0, %v1813_v14, 0.0  ;;  %v334_v14 = vmul.f32 %v1407_v5, %v1407_v5  ;;  %v333_v15 = vmul.f32 %v1393_v1, %v1393_v1 }
  0x74   :  { %v338_v1 = vmul.f32 %v1416_v8, %v1416_v8 }
  0x75   :  { %v400_v55 = vsel %vm75_vm0, %v334_v14, 0.0  ;;  %v397_v54 = vsel %vm75_vm0, %v333_v15, 0.0  ;;  %v337_v14 = vmul.f32 %v1421_v9, %v1421_v9 }
  0x76   :  { %v412_v15 = vsel %vm75_vm0, %v338_v1, 0.0  ;;  %v343_v1 = vmul.f32 %v1463_v21, %v1463_v21 }
  0x77   :  { %254 = vadd.xlane.f32.xlu1 %v253_v62  ;;  %251 = vadd.xlane.f32.xlu0 %v250_v63  ;;  %v265_v62 = vsel %vm75_vm0, %v1822_v47, 0.0  ;;  %v262_v63 = vsel %vm75_vm0, %v1827_v46, 0.0 }
  0x7b   :  { %260 = vadd.xlane.f32.xlu1 %v259_v30  ;;  %257 = vadd.xlane.f32.xlu0 %v256_v31  ;;  %v336_v30 = vmul.f32 %v1398_v2, %v1398_v2  ;;  %v335_v31 = vmul.f32 %v1388_v0, %v1388_v0  ;;  %v409_v2 = vsel %vm75_vm0, %v337_v14, 0.0  ;;  %v340_v0 = vmul.f32 %v1430_v12, %v1430_v12 }
  0x7d   :  { %v406_v46 = vsel %vm75_vm0, %v336_v30, 0.0  ;;  %v403_v5 = vsel %vm75_vm0, %v335_v31, 0.0  ;;  %v418_v9 = vsel %vm75_vm0, %v340_v0, 0.0  ;;  %v345_v0 = vmul.f32 %v1477_v25, %v1477_v25 }
  0x7f   :  { %266 = vadd.xlane.f32.xlu1 %v265_v62  ;;  %263 = vadd.xlane.f32.xlu0 %v262_v63  ;;  %v342_v62 = vmul.f32 %v1444_v16, %v1444_v16  ;;  %v341_v63 = vmul.f32 %v1449_v17, %v1449_v17 }
  0x81   :  { %v424_v30 = vsel %vm75_vm0, %v342_v62, 0.0  ;;  %v421_v31 = vsel %vm75_vm0, %v341_v63, 0.0  ;;  %v347_v62 = vmul.f32 %v1491_v29, %v1491_v29 }
  0x83   :  { %401 = vadd.xlane.f32.xlu1 %v400_v55  ;;  %398 = vadd.xlane.f32.xlu0 %v397_v54  ;;  %v339_v54 = vmul.f32 %v1435_v13, %v1435_v13 }
  0x87   :  { %407 = vadd.xlane.f32.xlu1 %v406_v46  ;;  %404 = vadd.xlane.f32.xlu0 %v403_v5  ;;  %v415_v46 = vsel %vm75_vm0, %v339_v54, 0.0  ;;  %v344_v5 = vmul.f32 %v1458_v20, %v1458_v20 }
  0x89   :  { %v430_v14 = vsel %vm75_vm0, %v344_v5, 0.0  ;;  %v349_v5 = vmul.f32 %v1505_v33, %v1505_v33 }
  0x8b   :  { %413 = vadd.xlane.f32.xlu1 %v412_v15  ;;  %410 = vadd.xlane.f32.xlu0 %v409_v2  ;;  %v427_v15 = vsel %vm75_vm0, %v343_v1, 0.0  ;;  %v346_v2 = vmul.f32 %v1472_v24, %v1472_v24 }
  0x8c   :  { %v1855_v55 = vpop.xlane.xlu1 %83  ;;  %v1857_v8 = vpop.xlane.xlu0 %77 }
  0x8d   :  { %v436_v54 = vsel %vm75_vm0, %v346_v2, 0.0  ;;  %v351_v2 = vmul.f32 %v1519_v37, %v1519_v37 }
  0x8f   :  { %419 = vadd.xlane.f32.xlu1 %v418_v9  ;;  %416 = vadd.xlane.f32.xlu0 %v415_v46  ;;  %v433_v9 = vsel %vm75_vm0, %v345_v0, 0.0  ;;  %v348_v46 = vmul.f32 %v1486_v28, %v1486_v28 }
  0x90   :  { %v1865_v12 = vpop.xlane.xlu1 %86  ;;  %v1867_v13 = vpop.xlane.xlu0 %80 }
  0x91   :  { %v442_v63 = vsel %vm75_vm0, %v348_v46, 0.0  ;;  %v353_v46 = vmul.f32 %v1533_v41, %v1533_v41 }
  0x93   :  { %425 = vadd.xlane.f32.xlu1 %v424_v30  ;;  %422 = vadd.xlane.f32.xlu0 %v421_v31  ;;  %v439_v30 = vsel %vm75_vm0, %v347_v62, 0.0  ;;  %v350_v31 = vmul.f32 %v1500_v32, %v1500_v32 }
  0x94   :  { %v1875_v16 = vpop.xlane.xlu1 %92  ;;  %v1877_v17 = vpop.xlane.xlu0 %89 }
  0x95   :  { %v448_v1 = vsel %vm75_vm0, %v350_v31, 0.0  ;;  %v355_v31 = vmul.f32 %v1547_v45, %v1547_v45 }
  0x97   :  { %431 = vadd.xlane.f32.xlu1 %v430_v14  ;;  %428 = vadd.xlane.f32.xlu0 %v427_v15  ;;  %v445_v14 = vsel %vm75_vm0, %v349_v5, 0.0  ;;  %v352_v15 = vmul.f32 %v1514_v36, %v1514_v36 }
  0x98   :  { %v1885_v20 = vpop.xlane.xlu1 %98  ;;  %v1887_v21 = vpop.xlane.xlu0 %95 }
  0x99   :  { %v454_v0 = vsel %vm75_vm0, %v352_v15, 0.0  ;;  %v357_v15 = vmul.f32 %v1561_v49, %v1561_v49 }
  0x9b   :  { %437 = vadd.xlane.f32.xlu1 %v436_v54  ;;  %434 = vadd.xlane.f32.xlu0 %v433_v9  ;;  %v451_v54 = vsel %vm75_vm0, %v351_v2, 0.0  ;;  %v354_v9 = vmul.f32 %v1528_v40, %v1528_v40 }
  0x9c   :  { %v1895_v24 = vpop.xlane.xlu1 %104  ;;  %v1897_v25 = vpop.xlane.xlu0 %101 }
  0x9d   :  { %v460_v62 = vsel %vm75_vm0, %v354_v9, 0.0  ;;  %v359_v9 = vmul.f32 %v1575_v53, %v1575_v53 }
  0x9f   :  { %443 = vadd.xlane.f32.xlu1 %v442_v63  ;;  %440 = vadd.xlane.f32.xlu0 %v439_v30  ;;  %v457_v63 = vsel %vm75_vm0, %v353_v46, 0.0  ;;  %v356_v30 = vmul.f32 %v1542_v44, %v1542_v44 }
  0xa0   :  { %v1905_v28 = vpop.xlane.xlu1 %110  ;;  %v1907_v29 = vpop.xlane.xlu0 %107 }
  0xa1   :  { %v466_v5 = vsel %vm75_vm0, %v356_v30, 0.0  ;;  %v361_v30 = vmul.f32 %v1589_v57, %v1589_v57 }
  0xa3   :  { %449 = vadd.xlane.f32.xlu1 %v448_v1  ;;  %446 = vadd.xlane.f32.xlu0 %v445_v14  ;;  %v463_v1 = vsel %vm75_vm0, %v355_v31, 0.0  ;;  %v358_v14 = vmul.f32 %v1556_v48, %v1556_v48 }
  0xa4   :  { %v1915_v32 = vpop.xlane.xlu1 %116  ;;  %v1917_v33 = vpop.xlane.xlu0 %113 }
  0xa5   :  { %v472_v2 = vsel %vm75_vm0, %v358_v14, 0.0  ;;  %v363_v14 = vmul.f32 %v1603_v61, %v1603_v61 }
  0xa7   :  { %455 = vadd.xlane.f32.xlu1 %v454_v0  ;;  %452 = vadd.xlane.f32.xlu0 %v451_v54  ;;  %v469_v0 = vsel %vm75_vm0, %v357_v15, 0.0  ;;  %v360_v54 = vmul.f32 %v1570_v52, %v1570_v52 }
  0xa8   :  { %v1925_v36 = vpop.xlane.xlu1 %122  ;;  %v1927_v37 = vpop.xlane.xlu0 %119 }
  0xa9   :  { %v478_v46 = vsel %vm75_vm0, %v360_v54, 0.0  ;;  %v365_v54 = vmul.f32 %v1617_v4, %v1617_v4 }
  0xab   :  { %461 = vadd.xlane.f32.xlu1 %v460_v62  ;;  %458 = vadd.xlane.f32.xlu0 %v457_v63  ;;  %v475_v62 = vsel %vm75_vm0, %v359_v9, 0.0  ;;  %v362_v63 = vmul.f32 %v1584_v56, %v1584_v56 }
  0xac   :  { %v1935_v40 = vpop.xlane.xlu1 %128  ;;  %v1937_v41 = vpop.xlane.xlu0 %125 }
  0xad   :  { %v484_v31 = vsel %vm75_vm0, %v362_v63, 0.0  ;;  %v367_v63 = vmul.f32 %v1631_v11, %v1631_v11 }
  0xaf   :  { %467 = vadd.xlane.f32.xlu1 %v466_v5  ;;  %464 = vadd.xlane.f32.xlu0 %v463_v1  ;;  %v481_v5 = vsel %vm75_vm0, %v361_v30, 0.0  ;;  %v364_v1 = vmul.f32 %v1598_v60, %v1598_v60 }
  0xb0   :  { %v1945_v44 = vpop.xlane.xlu1 %134  ;;  %v1947_v45 = vpop.xlane.xlu0 %131 }
  0xb1   :  { %v490_v15 = vsel %vm75_vm0, %v364_v1, 0.0  ;;  %v369_v1 = vmul.f32 %v1645_v19, %v1645_v19 }
  0xb3   :  { %473 = vadd.xlane.f32.xlu1 %v472_v2  ;;  %470 = vadd.xlane.f32.xlu0 %v469_v0  ;;  %v487_v2 = vsel %vm75_vm0, %v363_v14, 0.0  ;;  %v366_v0 = vmul.f32 %v1612_v3, %v1612_v3 }
  0xb4   :  { %v1955_v48 = vpop.xlane.xlu1 %140  ;;  %v1957_v49 = vpop.xlane.xlu0 %137 }
  0xb5   :  { %v496_v9 = vsel %vm75_vm0, %v366_v0, 0.0  ;;  %v371_v0 = vmul.f32 %v1659_v27, %v1659_v27 }
  0xb7   :  { %479 = vadd.xlane.f32.xlu1 %v478_v46  ;;  %476 = vadd.xlane.f32.xlu0 %v475_v62  ;;  %v493_v46 = vsel %vm75_vm0, %v365_v54, 0.0  ;;  %v368_v62 = vmul.f32 %v1626_v10, %v1626_v10 }
  0xb8   :  { %v1965_v52 = vpop.xlane.xlu1 %146  ;;  %v1967_v53 = vpop.xlane.xlu0 %143 }
  0xb9   :  { %v502_v30 = vsel %vm75_vm0, %v368_v62, 0.0  ;;  %v373_v62 = vmul.f32 %v1673_v35, %v1673_v35 }
  0xbb   :  { %485 = vadd.xlane.f32.xlu1 %v484_v31  ;;  %482 = vadd.xlane.f32.xlu0 %v481_v5  ;;  %v499_v31 = vsel %vm75_vm0, %v367_v63, 0.0  ;;  %v370_v5 = vmul.f32 %v1640_v18, %v1640_v18 }
  0xbc   :  { %v1975_v56 = vpop.xlane.xlu1 %152  ;;  %v1977_v57 = vpop.xlane.xlu0 %149 }
  0xbd   :  { %v508_v14 = vsel %vm75_vm0, %v370_v5, 0.0  ;;  %v375_v5 = vmul.f32 %v1687_v43, %v1687_v43 }
  0xbf   :  { %491 = vadd.xlane.f32.xlu1 %v490_v15  ;;  %488 = vadd.xlane.f32.xlu0 %v487_v2  ;;  %v505_v15 = vsel %vm75_vm0, %v369_v1, 0.0  ;;  %v372_v2 = vmul.f32 %v1654_v26, %v1654_v26 }
  0xc0   :  { %v1985_v60 = vpop.xlane.xlu1 %158  ;;  %v1987_v61 = vpop.xlane.xlu0 %155 }
  0xc1   :  { %v514_v54 = vsel %vm75_vm0, %v372_v2, 0.0  ;;  %v377_v2 = vmul.f32 %v1701_v51, %v1701_v51 }
  0xc3   :  { %497 = vadd.xlane.f32.xlu1 %v496_v9  ;;  %494 = vadd.xlane.f32.xlu0 %v493_v46  ;;  %v511_v9 = vsel %vm75_vm0, %v371_v0, 0.0  ;;  %v374_v46 = vmul.f32 %v1668_v34, %v1668_v34 }
  0xc4   :  { %v1995_v3 = vpop.xlane.xlu1 %164  ;;  %v1997_v4 = vpop.xlane.xlu0 %161 }
  0xc5   :  { %v520_v63 = vsel %vm75_vm0, %v374_v46, 0.0  ;;  %v379_v46 = vmul.f32 %v1715_v59, %v1715_v59 }
  0xc7   :  { %503 = vadd.xlane.f32.xlu1 %v502_v30  ;;  %500 = vadd.xlane.f32.xlu0 %v499_v31  ;;  %v517_v30 = vsel %vm75_vm0, %v373_v62, 0.0  ;;  %v376_v31 = vmul.f32 %v1682_v42, %v1682_v42 }
  0xc8   :  { %v2005_v10 = vpop.xlane.xlu1 %170  ;;  %v2007_v11 = vpop.xlane.xlu0 %167 }
  0xc9   :  { %v526_v1 = vsel %vm75_vm0, %v376_v31, 0.0  ;;  %v381_v31 = vmul.f32 %v1729_v7, %v1729_v7 }
  0xcb   :  { %509 = vadd.xlane.f32.xlu1 %v508_v14  ;;  %506 = vadd.xlane.f32.xlu0 %v505_v15  ;;  %v523_v14 = vsel %vm75_vm0, %v375_v5, 0.0  ;;  %v378_v15 = vmul.f32 %v1696_v50, %v1696_v50 }
  0xcc   :  { %v2015_v18 = vpop.xlane.xlu1 %176  ;;  %v2017_v19 = vpop.xlane.xlu0 %173 }
  0xcd   :  { %v532_v0 = vsel %vm75_vm0, %v378_v15, 0.0  ;;  %v383_v15 = vmul.f32 %v1743_v23, %v1743_v23 }
  0xcf   :  { %515 = vadd.xlane.f32.xlu1 %v514_v54  ;;  %512 = vadd.xlane.f32.xlu0 %v511_v9  ;;  %v529_v54 = vsel %vm75_vm0, %v377_v2, 0.0  ;;  %v380_v9 = vmul.f32 %v1710_v58, %v1710_v58 }
  0xd0   :  { %v2025_v26 = vpop.xlane.xlu1 %182  ;;  %v2027_v27 = vpop.xlane.xlu0 %179 }
  0xd1   :  { %v538_v62 = vsel %vm75_vm0, %v380_v9, 0.0  ;;  %v385_v9 = vmul.f32 %v1757_v39, %v1757_v39 }
  0xd3   :  { %521 = vadd.xlane.f32.xlu1 %v520_v63  ;;  %518 = vadd.xlane.f32.xlu0 %v517_v30  ;;  %v535_v63 = vsel %vm75_vm0, %v379_v46, 0.0  ;;  %v382_v30 = vmul.f32 %v1724_v6, %v1724_v6 }
  0xd4   :  { %v2035_v34 = vpop.xlane.xlu1 %188  ;;  %v2037_v35 = vpop.xlane.xlu0 %185 }
  0xd5   :  { %v544_v5 = vsel %vm75_vm0, %v382_v30, 0.0 }
  0xd7   :  { %527 = vadd.xlane.f32.xlu1 %v526_v1  ;;  %524 = vadd.xlane.f32.xlu0 %v523_v14  ;;  %v541_v1 = vsel %vm75_vm0, %v381_v31, 0.0  ;;  %v384_v14 = vmul.f32 %v1738_v22, %v1738_v22  ;;  %v2935_v31 = vld [vmem:[#allocation3_spill] sm:$0xff] }
  0xd8   :  { %v2045_v42 = vpop.xlane.xlu1 %194  ;;  %v2047_v43 = vpop.xlane.xlu0 %191 }
  0xd9   :  { %v550_v2 = vsel %vm75_vm0, %v384_v14, 0.0 }
  0xdb   :  { %533 = vadd.xlane.f32.xlu1 %v532_v0  ;;  %530 = vadd.xlane.f32.xlu0 %v529_v54  ;;  %v547_v0 = vsel %vm75_vm0, %v383_v15, 0.0  ;;  %v386_v54 = vmul.f32 %v1752_v38, %v1752_v38  ;;  %v2938_v15 = vld [vmem:[#allocation4_spill] sm:$0xff] }
  0xdc   :  { %v2055_v50 = vpop.xlane.xlu1 %200  ;;  %v2057_v51 = vpop.xlane.xlu0 %197 }
  0xdd   :  { %v556_v46 = vsel %vm75_vm0, %v386_v54, 0.0 }
  0xdf   :  { %539 = vadd.xlane.f32.xlu1 %v538_v62  ;;  %536 = vadd.xlane.f32.xlu0 %v535_v63  ;;  %v553_v62 = vsel %vm75_vm0, %v385_v9, 0.0  ;;  %v2934_v63 = vld [vmem:[#allocation2_spill] sm:$0xff] }
  0xe0   :  { %v2065_v58 = vpop.xlane.xlu1 %206  ;;  %v2067_v59 = vpop.xlane.xlu0 %203  ;;  %v388_v30 = vmul.f32 %v2934_v63, %v2934_v63 }
  0xe3   :  { %545 = vadd.xlane.f32.xlu1 %v544_v5  ;;  %542 = vadd.xlane.f32.xlu0 %v541_v1  ;;  %v387_v5 = vmul.f32 %v2935_v31, %v2935_v31  ;;  %v562_v1 = vsel %vm75_vm0, %v388_v30, 0.0  ;;  %v2942_v31 = vld [vmem:[#allocation6_spill] sm:$0xff] }
  0xe4   :  { %v2075_v6 = vpop.xlane.xlu1 %212  ;;  %v2077_v7 = vpop.xlane.xlu0 %209  ;;  %v392_v30 = vmul.f32 %v2942_v31, %v2942_v31 }
  0xe5   :  { %v559_v14 = vsel %vm75_vm0, %v387_v5, 0.0  ;;  %v2943_v5 = vld [vmem:[#allocation7_spill] sm:$0xff] }
  0xe7   :  { %551 = vadd.xlane.f32.xlu1 %v550_v2  ;;  %548 = vadd.xlane.f32.xlu0 %v547_v0  ;;  %v390_v2 = vmul.f32 %v2938_v15, %v2938_v15  ;;  %v2939_v0 = vld [vmem:[#allocation5_spill] sm:$0xff] }
  0xe8   :  { %v2085_v22 = vpop.xlane.xlu1 %218  ;;  %v2087_v23 = vpop.xlane.xlu0 %215  ;;  %v389_v54 = vmul.f32 %v2939_v0, %v2939_v0 }
  0xea   :  { %v565_v63 = vsel %vm75_vm0, %v389_v54, 0.0  ;;  %v2947_v54 = vld [vmem:[#allocation9_spill] sm:$0xff] }
  0xeb   :  { %557 = vadd.xlane.f32.xlu1 %v556_v46  ;;  %554 = vadd.xlane.f32.xlu0 %v553_v62  ;;  %v568_v62 = vsel %vm75_vm0, %v390_v2, 0.0 }
  0xec   :  { %v2095_v38 = vpop.xlane.xlu1 %224  ;;  %v2097_v39 = vpop.xlane.xlu0 %221 }
  0xed   :  { %2936 = vst [vmem:[#allocation2_spill] sm:$0xff] %v2095_v38  ;;  %2937 = vst [vmem:[#allocation3_spill] sm:$0xff] %v2097_v39  ;;  %v391_v39 = vmul.f32 %v2943_v5, %v2943_v5 }
  0xef   :  { %563 = vadd.xlane.f32.xlu1 %v562_v1  ;;  %560 = vadd.xlane.f32.xlu0 %v559_v14  ;;  %v574_v14 = vsel %vm75_vm0, %v392_v30, 0.0  ;;  %v571_v0 = vsel %vm75_vm0, %v391_v39, 0.0  ;;  %v396_v30 = vmul.f32 %v1822_v47, %v1822_v47  ;;  %v2950_v39 = vld [vmem:[#allocation10_spill] sm:$0xff]  ;;  %v271_v47 = vmul.f32 0.020833334, %v1855_v55 }
  0xf0   :  { %v2105_v9 = vpop.xlane.xlu1 %230  ;;  %v2107_v46 = vpop.xlane.xlu0 %227 }
  0xf1   :  { %2940 = vst [vmem:[#allocation4_spill] sm:$0xff] %v2105_v9  ;;  %2941 = vst [vmem:[#allocation5_spill] sm:$0xff] %v2107_v46  ;;  %v2946_v46 = vld [vmem:[#allocation8_spill] sm:$0xff]  ;;  %v393_v9 = vmul.f32 %v2947_v54, %v2947_v54 }
  0xf2   :  { %v394_v2 = vmul.f32 %v2946_v46, %v2946_v46 }
  0xf3   :  { %569 = vadd.xlane.f32.xlu1 %v568_v62  ;;  %566 = vadd.xlane.f32.xlu0 %v565_v63  ;;  %v577_v5 = vsel %vm75_vm0, %v393_v9, 0.0 }
  0xf4   :  { %v2115_v15 = vpop.xlane.xlu1 %236  ;;  %v2117_v1 = vpop.xlane.xlu0 %233  ;;  %v580_v63 = vsel %vm75_vm0, %v394_v2, 0.0 }
  0xf5   :  { %2944 = vst [vmem:[#allocation6_spill] sm:$0xff] %v2115_v15  ;;  %2945 = vst [vmem:[#allocation7_spill] sm:$0xff] %v2117_v1  ;;  %v395_v1 = vmul.f32 %v2950_v39, %v2950_v39  ;;  %v269_v39 = vmul.f32 0.020833334, %v1857_v8  ;;  %v278_v8 = vmul.f32 0.020833334, %v1895_v24 }
  0xf7   :  { %575 = vadd.xlane.f32.xlu1 %v574_v14  ;;  %572 = vadd.xlane.f32.xlu0 %v571_v0  ;;  %v586_v0 = vsel %vm75_vm0, %v396_v30, 0.0  ;;  %v583_v54 = vsel %vm75_vm0, %v395_v1, 0.0  ;;  %v273_v30 = vmul.f32 0.020833334, %v1877_v17  ;;  %v653_v55 = vmul.f32 %v269_v39, %v269_v39 }
  0xf8   :  { %v2125_v31 = vpop.xlane.xlu1 %242  ;;  %v2127_v62 = vpop.xlane.xlu0 %239  ;;  %v280_v17 = vmul.f32 0.020833334, %v1905_v28  ;;  %v284_v28 = vmul.f32 0.020833334, %v1925_v36 }
  0xf9   :  { %2948 = vst [vmem:[#allocation8_spill] sm:$0xff] %v2125_v31  ;;  %2949 = vst [vmem:[#allocation9_spill] sm:$0xff] %v2127_v62 }
  0xfb   :  { %581 = vadd.xlane.f32.xlu1 %v580_v63  ;;  %578 = vadd.xlane.f32.xlu0 %v577_v5  ;;  %v272_v63 = vmul.f32 0.020833334, %v1865_v12  ;;  %v270_v5 = vmul.f32 0.020833334, %v1867_v13  ;;  %v277_v12 = vmul.f32 0.020833334, %v1897_v25 }
  0xfc   :  { %v2135_v46 = vpop.xlane.xlu1 %248  ;;  %v2137_v14 = vpop.xlane.xlu0 %245 }
  0xfd   :  { %2951 = vst [vmem:[#allocation10_spill] sm:$0xff] %v2135_v46  ;;  %2952 = vst [vmem:[#allocation11_spill] sm:$0xff] %v2137_v14  ;;  %v274_v14 = vmul.f32 0.020833334, %v1875_v16  ;;  %v2161_v13 = vmul.f32 %v272_v63, %v272_v63  ;;  %v654_v16 = vmul.f32 %v270_v5, %v270_v5  ;;  %v2183_v63 = vmul.f32 %v277_v12, %v277_v12 }
  0xfe   :  { %v2187_v5 = vmul.f32 %v280_v17, %v280_v17 }
  0xff   :  { %587 = vadd.xlane.f32.xlu1 %v586_v0  ;;  %584 = vadd.xlane.f32.xlu0 %v583_v54  ;;  %v276_v0 = vmul.f32 0.020833334, %v1885_v20  ;;  %v275_v54 = vmul.f32 0.020833334, %v1887_v21  ;;  %v282_v20 = vmul.f32 0.020833334, %v1915_v32 }
 0x100   :  { %v2141_v2 = vpop.xlane.xlu1 %254  ;;  %v2143_v9 = vpop.xlane.xlu0 %251  ;;  %v281_v21 = vmul.f32 0.020833334, %v1917_v33  ;;  %v286_v32 = vmul.f32 0.020833334, %v1935_v40  ;;  %v285_v33 = vmul.f32 0.020833334, %v1937_v41 }
 0x101   :  { %2953 = vst [vmem:[#allocation12_spill] sm:$0xff] %v2141_v2  ;;  %2954 = vst [vmem:[#allocation13_spill] sm:$0xff] %v2143_v9  ;;  %v2157_v9 = vmul.f32 %v271_v47, %v271_v47  ;;  %v2165_v2 = vmul.f32 %v274_v14, %v274_v14  ;;  %v2175_v25 = vmul.f32 %v276_v0, %v276_v0  ;;  %v288_v0 = vmul.f32 0.020833334, %v1945_v44 }
 0x102   :  { %v2177_v39 = vmul.f32 %v275_v54, %v275_v54  ;;  %v2181_v14 = vmul.f32 %v278_v8, %v278_v8  ;;  %v287_v54 = vmul.f32 0.020833334, %v1947_v45  ;;  %v2195_v36 = vmul.f32 %v281_v21, %v281_v21 }
 0x103   :  { %v289_v8 = vmul.f32 0.020833334, %v1957_v49  ;;  %v2203_v62 = vmul.f32 %v286_v32, %v286_v32  ;;  %v2205_v44 = vmul.f32 %v285_v33, %v285_v33  ;;  %v292_v45 = vmul.f32 0.020833334, %v1965_v52 }
 0x104   :  { %v2151_v46 = vpop.xlane.xlu1 %260  ;;  %v2153_v1 = vpop.xlane.xlu0 %257  ;;  %v2209_v21 = vmul.f32 %v288_v0, %v288_v0  ;;  %v293_v32 = vmul.f32 0.020833334, %v1977_v57 }
 0x105   :  { %2955 = vst [vmem:[#allocation14_spill] sm:$0xff] %v2151_v46  ;;  %2956 = vst [vmem:[#allocation15_spill] sm:$0xff] %v2153_v1  ;;  %v279_v46 = vmul.f32 0.020833334, %v1907_v29  ;;  %v2167_v1 = vmul.f32 %v273_v30, %v273_v30  ;;  %v283_v29 = vmul.f32 0.020833334, %v1927_v37  ;;  %v2219_v0 = vmul.f32 %v292_v45, %v292_v45 }
 0x106   :  { %v290_v37 = vmul.f32 0.020833334, %v1955_v48  ;;  %v2211_v48 = vmul.f32 %v287_v54, %v287_v54  ;;  %v297_v45 = vmul.f32 0.020833334, %v1997_v4 }
 0x107   :  { %v2189_v30 = vmul.f32 %v279_v46, %v279_v46  ;;  %v2201_v41 = vmul.f32 %v283_v29, %v283_v29  ;;  %v2215_v29 = vmul.f32 %v289_v8, %v289_v8 }
 0x108   :  { %v2171_v47 = vpop.xlane.xlu1 %266  ;;  %v2173_v24 = vpop.xlane.xlu0 %263  ;;  %v2241_v4 = vmul.f32 %v297_v45, %v297_v45 }
 0x109   :  { %2957 = vst [vmem:[#allocation16_spill] sm:$0xff] %v2171_v47  ;;  %2958 = vst [vmem:[#allocation17_spill] sm:$0xff] %v2173_v24  ;;  %v2193_v24 = vmul.f32 %v282_v20, %v282_v20  ;;  %v2199_v47 = vmul.f32 %v284_v28, %v284_v28  ;;  %v291_v20 = vmul.f32 0.020833334, %v1967_v53  ;;  %v2213_v28 = vmul.f32 %v290_v37, %v290_v37 }
 0x10b   :  { %v2221_v54 = vmul.f32 %v291_v20, %v291_v20 }
 0x10c   :  { %v402_v12 = vpop.xlane.xlu1 %401  ;;  %v399_v40 = vpop.xlane.xlu0 %398 }
 0x10d   :  { %v590_v46 = vmul.f32 0.020833334, %v402_v12  ;;  %v589_v17 = vmul.f32 0.020833334, %v399_v40  ;;  %v294_v12 = vmul.f32 0.020833334, %v1975_v56 }
 0x10f   :  { %v718_v49 = vsub.f32 %v590_v46, %v654_v16  ;;  %v717_v31 = vsub.f32 %v589_v17, %v653_v55  ;;  %v296_v55 = vmul.f32 0.020833334, %v1985_v60  ;;  %v295_v16 = vmul.f32 0.020833334, %v1987_v61 }
 0x110   :  { %v408_v33 = vpop.xlane.xlu1 %407  ;;  %v405_v40 = vpop.xlane.xlu0 %404  ;;  %v2227_v46 = vmul.f32 %v294_v12, %v294_v12  ;;  %v2229_v17 = vmul.f32 %v293_v32, %v293_v32 }
 0x111   :  { %v782_v15 = vmax.f32 %v718_v49, 0.0  ;;  %v781_v52 = vmax.f32 %v717_v31, 0.0  ;;  %v592_v38 = vmul.f32 0.020833334, %v408_v33  ;;  %v591_v53 = vmul.f32 0.020833334, %v405_v40 }
 0x112   :  { %v298_v31 = vmul.f32 0.020833334, %v1995_v3 }
 0x113   :  { %v846_v37 = vadd.f32 1e-05, %v782_v15  ;;  %v845_v8 = vadd.f32 1e-05, %v781_v52  ;;  %v720_v56 = vsub.f32 %v592_v38, %v2161_v13  ;;  %v719_v57 = vsub.f32 %v591_v53, %v2157_v9 }
 0x114   :  { %v414_v20 = vpop.xlane.xlu1 %413  ;;  %v411_v49 = vpop.xlane.xlu0 %410  ;;  %v2233_v15 = vmul.f32 %v296_v55, %v296_v55  ;;  %v300_v38 = vmul.f32 0.020833334, %v2005_v10  ;;  %v2236_v13 = vmul.f32 %v295_v16, %v295_v16  ;;  %v2239_v40 = vmul.f32 %v298_v31, %v298_v31 }
 0x115   :  { %1177 = vrsqrt.f32 %v846_v37  ;;  %v784_v60 = vmax.f32 %v720_v56, 0.0  ;;  %v783_v33 = vmax.f32 %v719_v57, 0.0  ;;  %v594_v61 = vmul.f32 0.020833334, %v414_v20 }
 0x116   :  { %1179 = vrsqrt.f32 %v845_v8  ;;  %v593_v9 = vmul.f32 0.020833334, %v411_v49  ;;  %v299_v52 = vmul.f32 0.020833334, %v2007_v11  ;;  %v2245_v16 = vmul.f32 %v300_v38, %v300_v38 }
 0x117   :  { %v848_v12 = vadd.f32 1e-05, %v784_v60  ;;  %v847_v32 = vadd.f32 1e-05, %v783_v33  ;;  %v722_v3 = vsub.f32 %v594_v61, %v2165_v2  ;;  %v302_v57 = vmul.f32 0.020833334, %v2015_v18 }
 0x118   :  { %v721_v53 = vsub.f32 %v593_v9, %v2167_v1  ;;  %v420_v55 = vpop.xlane.xlu1 %419  ;;  %v417_v37 = vpop.xlane.xlu0 %416  ;;  %v301_v31 = vmul.f32 0.020833334, %v2017_v19  ;;  %v2251_v1 = vmul.f32 %v299_v52, %v299_v52  ;;  %v304_v49 = vmul.f32 0.020833334, %v2025_v26 }
 0x119   :  { %1181 = vrsqrt.f32 %v848_v12  ;;  %v786_v10 = vmax.f32 %v722_v3, 0.0  ;;  %v596_v8 = vmul.f32 0.020833334, %v420_v55  ;;  %v595_v56 = vmul.f32 0.020833334, %v417_v37 }
 0x11a   :  { %1183 = vrsqrt.f32 %v847_v32  ;;  %v785_v2 = vmax.f32 %v721_v53, 0.0  ;;  %v303_v60 = vmul.f32 0.020833334, %v2027_v27  ;;  %v2255_v32 = vmul.f32 %v302_v57, %v302_v57 }
 0x11b   :  { %v850_v45 = vadd.f32 1e-05, %v786_v10  ;;  %v724_v20 = vsub.f32 %v596_v8, %v2175_v25  ;;  %v723_v11 = vsub.f32 %v595_v56, %v2177_v39  ;;  %v306_v19 = vmul.f32 0.020833334, %v2035_v34 }
 0x11c   :  { %v849_v33 = vadd.f32 1e-05, %v785_v2  ;;  %v426_v61 = vpop.xlane.xlu1 %425  ;;  %v423_v38 = vpop.xlane.xlu0 %422  ;;  %v2258_v39 = vmul.f32 %v301_v31, %v301_v31  ;;  %v2261_v27 = vmul.f32 %v304_v49, %v304_v49  ;;  %v2263_v53 = vmul.f32 %v303_v60, %v303_v60 }
 0x11d   :  { %1185 = vrsqrt.f32 %v850_v45  ;;  %v788_v18 = vmax.f32 %v724_v20, 0.0  ;;  %v787_v9 = vmax.f32 %v723_v11, 0.0  ;;  %v598_v12 = vmul.f32 0.020833334, %v426_v61 }
 0x11e   :  { %1187 = vrsqrt.f32 %v849_v33  ;;  %v597_v25 = vmul.f32 0.020833334, %v423_v38  ;;  %v305_v55 = vmul.f32 0.020833334, %v2037_v35  ;;  %v2267_v31 = vmul.f32 %v306_v19, %v306_v19  ;;  %v1306_v38 = vld [vmem:[%s2913_s0] sm:$0xff] }
 0x11f   :  { %v852_v3 = vadd.f32 1e-05, %v788_v18  ;;  %v851_v52 = vadd.f32 1e-05, %v787_v9  ;;  %v726_v26 = vsub.f32 %v598_v12, %v2181_v14  ;;  %v308_v45 = vmul.f32 0.020833334, %v2045_v42 }
 0x120   :  { %v725_v37 = vsub.f32 %v597_v25, %v2183_v63  ;;  %v432_v10 = vpop.xlane.xlu1 %431  ;;  %v429_v8 = vpop.xlane.xlu0 %428  ;;  %v2273_v14 = vld [vmem:[%s2914_s1] ss:$0 sm:$0xff]  ;;  %v1305_v63 = vld [vmem:[%s2913_s0 + $0x8] sm:$0xff]  ;;  %v2280_v61 = vmul.f32 %v305_v55, %v305_v55  ;;  %v307_v42 = vmul.f32 0.020833334, %v2047_v43 }
 0x121   :  { %1189 = vrsqrt.f32 %v852_v3  ;;  %v790_v34 = vmax.f32 %v726_v26, 0.0  ;;  %v600_v56 = vmul.f32 0.020833334, %v432_v10  ;;  %v599_v57 = vmul.f32 0.020833334, %v429_v8  ;;  %v1307_v10 = vld [vmem:[%s2913_s0 + $0x18] sm:$0xff] }
 0x122   :  { %v1178_v2 = vpop.eup %1177  ;;  %1191 = vrsqrt.f32 %v851_v52  ;;  %v789_v35 = vmax.f32 %v725_v37, 0.0  ;;  %v2288_v37 = vmul.f32 %v308_v45, %v308_v45 }
 0x123   :  { %v1180_v20 = vpop.eup %1179  ;;  %v975_v11 = vmul.f32 %v1305_v63, %v1178_v2  ;;  %v854_v49 = vadd.f32 1e-05, %v790_v34  ;;  %v728_v60 = vsub.f32 %v600_v56, %v2187_v5  ;;  %v727_v33 = vsub.f32 %v599_v57, %v2189_v30  ;;  %v1308_v2 = vld [vmem:[%s2913_s0 + $0x10] sm:$0xff] }
 0x124   :  { %v974_v18 = vmul.f32 %v1306_v38, %v1180_v20  ;;  %v853_v9 = vadd.f32 1e-05, %v789_v35  ;;  %v438_v12 = vpop.xlane.xlu1 %437  ;;  %v435_v19 = vpop.xlane.xlu0 %434  ;;  %v310_v57 = vmul.f32 0.020833334, %v2055_v50 }
 0x125   :  { %v1045_v25 = vmul.f32 %v2273_v14, %v975_v11  ;;  %1193 = vrsqrt.f32 %v854_v49  ;;  %v792_v3 = vmax.f32 %v728_v60, 0.0  ;;  %v791_v52 = vmax.f32 %v727_v33, 0.0 }
 0x126   :  { %v1182_v5 = vpop.eup %1181  ;;  %v1044_v30 = vmul.f32 %v2273_v14, %v974_v18  ;;  %1195 = vrsqrt.f32 %v853_v9  ;;  %v602_v26 = vmul.f32 0.020833334, %v438_v12  ;;  %v601_v55 = vmul.f32 0.020833334, %v435_v19 }
 0x127   :  { %v1184_v43 = vpop.eup %1183  ;;  %1109 = vst.msk [vmem:[%s2915_s2 + $0x8] sm:$0xff] %vm75_vm0, %v1045_v25  ;;  %v977_v8 = vmul.f32 %v1307_v10, %v1182_v5  ;;  %v856_v34 = vadd.f32 1e-05, %v792_v3  ;;  %v855_v56 = vadd.f32 1e-05, %v791_v52  ;;  %v2309_v19 = vmul.f32 %v307_v42, %v307_v42  ;;  %v1310_v42 = vld [vmem:[%s2913_s0 + $0x20] sm:$0xff] }
 0x128   :  { %1108 = vst.msk [vmem:[%s2915_s2] sm:$0xff] %vm75_vm0, %v1044_v30  ;;  %v976_v45 = vmul.f32 %v1308_v2, %v1184_v43  ;;  %v730_v35 = vsub.f32 %v602_v26, %v2193_v24  ;;  %v729_v20 = vsub.f32 %v601_v55, %v2195_v36  ;;  %v444_v63 = vpop.xlane.xlu1 %443  ;;  %v441_v11 = vpop.xlane.xlu0 %440  ;;  %v1309_v24 = vld [vmem:[%s2913_s0 + $0x28] sm:$0xff]  ;;  %v309_v52 = vmul.f32 0.020833334, %v2057_v51 }
 0x129   :  { %v1047_v49 = vmul.f32 %v2273_v14, %v977_v8  ;;  %1197 = vrsqrt.f32 %v856_v34  ;;  %v604_v50 = vmul.f32 0.020833334, %v444_v63  ;;  %v603_v60 = vmul.f32 0.020833334, %v441_v11 }
 0x12a   :  { %v1186_v33 = vpop.eup %1185  ;;  %v1046_v38 = vmul.f32 %v2273_v14, %v976_v45  ;;  %1199 = vrsqrt.f32 %v855_v56  ;;  %v794_v18 = vmax.f32 %v730_v35, 0.0  ;;  %v793_v9 = vmax.f32 %v729_v20, 0.0  ;;  %v1311_v35 = vld [vmem:[%s2913_s0 + $0x38] sm:$0xff] }
 0x12b   :  { %v1188_v12 = vpop.eup %1187  ;;  %1111 = vst.msk [vmem:[%s2915_s2 + $0x18] sm:$0xff] %vm75_vm0, %v1047_v49  ;;  %v979_v36 = vmul.f32 %v1309_v24, %v1186_v33  ;;  %v732_v25 = vsub.f32 %v604_v50, %v2199_v47  ;;  %v731_v3 = vsub.f32 %v603_v60, %v2201_v41  ;;  %v2329_v34 = vmul.f32 %v310_v57, %v310_v57  ;;  %v1312_v49 = vld [vmem:[%s2913_s0 + $0x30] sm:$0xff] }
 0x12c   :  { %1110 = vst.msk [vmem:[%s2915_s2 + $0x10] sm:$0xff] %vm75_vm0, %v1046_v38  ;;  %v978_v5 = vmul.f32 %v1310_v42, %v1188_v12  ;;  %v858_v30 = vadd.f32 1e-05, %v794_v18  ;;  %v857_v26 = vadd.f32 1e-05, %v793_v9  ;;  %v450_v55 = vpop.xlane.xlu1 %449  ;;  %v447_v43 = vpop.xlane.xlu0 %446 }
 0x12d   :  { %v1049_v47 = vmul.f32 %v2273_v14, %v979_v36  ;;  %v796_v10 = vmax.f32 %v732_v25, 0.0  ;;  %v795_v41 = vmax.f32 %v731_v3, 0.0  ;;  %v606_v8 = vmul.f32 0.020833334, %v450_v55 }
 0x12e   :  { %v1190_v51 = vpop.eup %1189  ;;  %v1048_v56 = vmul.f32 %v2273_v14, %v978_v5  ;;  %1201 = vrsqrt.f32 %v858_v30  ;;  %v605_v2 = vmul.f32 0.020833334, %v447_v43  ;;  %v312_v57 = vmul.f32 0.020833334, %v2065_v58 }
 0x12f   :  { %v1192_v45 = vpop.eup %1191  ;;  %1113 = vst.msk [vmem:[%s2915_s2 + $0x28] sm:$0xff] %vm75_vm0, %v1049_v47  ;;  %v981_v20 = vmul.f32 %v1311_v35, %v1190_v51  ;;  %1203 = vrsqrt.f32 %v857_v26  ;;  %v860_v63 = vadd.f32 1e-05, %v796_v10  ;;  %v859_v11 = vadd.f32 1e-05, %v795_v41 }
 0x130   :  { %1112 = vst.msk [vmem:[%s2915_s2 + $0x20] sm:$0xff] %vm75_vm0, %v1048_v56  ;;  %v980_v50 = vmul.f32 %v1312_v49, %v1192_v45  ;;  %v734_v60 = vsub.f32 %v606_v8, %v2203_v62  ;;  %v733_v33 = vsub.f32 %v605_v2, %v2205_v44  ;;  %v456_v38 = vpop.xlane.xlu1 %455  ;;  %v453_v18 = vpop.xlane.xlu0 %452  ;;  %v2351_v5 = vmul.f32 %v309_v52, %v309_v52  ;;  %v1313_v62 = vld [vmem:[%s2913_s0 + $0x48] sm:$0xff]  ;;  %v1314_v52 = vld [vmem:[%s2913_s0 + $0x40] sm:$0xff] }
 0x131   :  { %v1051_v9 = vmul.f32 %v2273_v14, %v981_v20  ;;  %1205 = vrsqrt.f32 %v860_v63  ;;  %v608_v58 = vmul.f32 0.020833334, %v456_v38  ;;  %v607_v12 = vmul.f32 0.020833334, %v453_v18  ;;  %v1315_v63 = vld [vmem:[%s2913_s0 + $0x58] sm:$0xff] }
 0x132   :  { %v1194_v24 = vpop.eup %1193  ;;  %v1050_v36 = vmul.f32 %v2273_v14, %v980_v50  ;;  %1207 = vrsqrt.f32 %v859_v11  ;;  %v798_v25 = vmax.f32 %v734_v60, 0.0  ;;  %v797_v3 = vmax.f32 %v733_v33, 0.0  ;;  %v1316_v60 = vld [vmem:[%s2913_s0 + $0x50] sm:$0xff] }
 0x133   :  { %v1196_v42 = vpop.eup %1195  ;;  %1115 = vst.msk [vmem:[%s2915_s2 + $0x38] sm:$0xff] %vm75_vm0, %v1051_v9  ;;  %v983_v44 = vmul.f32 %v1313_v62, %v1194_v24  ;;  %v736_v30 = vsub.f32 %v608_v58, %v2209_v21  ;;  %v735_v26 = vsub.f32 %v607_v12, %v2211_v48  ;;  %v311_v55 = vmul.f32 0.020833334, %v2067_v59 }
 0x134   :  { %1114 = vst.msk [vmem:[%s2915_s2 + $0x30] sm:$0xff] %vm75_vm0, %v1050_v36  ;;  %v982_v43 = vmul.f32 %v1314_v52, %v1196_v42  ;;  %v862_v47 = vadd.f32 1e-05, %v798_v25  ;;  %v861_v10 = vadd.f32 1e-05, %v797_v3  ;;  %v462_v41 = vpop.xlane.xlu1 %461  ;;  %v459_v8 = vpop.xlane.xlu0 %458  ;;  %v2371_v2 = vmul.f32 %v312_v57, %v312_v57 }
 0x135   :  { %v1053_v21 = vmul.f32 %v2273_v14, %v983_v44  ;;  %v800_v51 = vmax.f32 %v736_v30, 0.0  ;;  %v799_v48 = vmax.f32 %v735_v26, 0.0  ;;  %v610_v56 = vmul.f32 0.020833334, %v462_v41 }
 0x136   :  { %v1198_v59 = vpop.eup %1197  ;;  %v1052_v45 = vmul.f32 %v2273_v14, %v982_v43  ;;  %1209 = vrsqrt.f32 %v862_v47  ;;  %v609_v35 = vmul.f32 0.020833334, %v459_v8  ;;  %v2381_v57 = vmul.f32 %v311_v55, %v311_v55 }
 0x137   :  { %v1200_v20 = vpop.eup %1199  ;;  %1117 = vst.msk [vmem:[%s2915_s2 + $0x48] sm:$0xff] %vm75_vm0, %v1053_v21  ;;  %v985_v11 = vmul.f32 %v1315_v63, %v1198_v59  ;;  %1211 = vrsqrt.f32 %v861_v10  ;;  %v864_v49 = vadd.f32 1e-05, %v800_v51  ;;  %v863_v50 = vadd.f32 1e-05, %v799_v48 }
 0x138   :  { %1116 = vst.msk [vmem:[%s2915_s2 + $0x40] sm:$0xff] %vm75_vm0, %v1052_v45  ;;  %v984_v33 = vmul.f32 %v1316_v60, %v1200_v20  ;;  %v738_v38 = vsub.f32 %v610_v56, %v2213_v28  ;;  %v737_v18 = vsub.f32 %v609_v35, %v2215_v29  ;;  %v468_v9 = vpop.xlane.xlu1 %467  ;;  %v465_v58 = vpop.xlane.xlu0 %464  ;;  %v314_v44 = vmul.f32 0.020833334, %v2075_v6  ;;  %v1317_v6 = vld [vmem:[%s2913_s0 + $0x68] sm:$0xff]  ;;  %v1319_v35 = vld [vmem:[%s2913_s0 + $0x78] sm:$0xff] }
 0x139   :  { %v1055_v12 = vmul.f32 %v2273_v14, %v985_v11  ;;  %1213 = vrsqrt.f32 %v864_v49  ;;  %v612_v24 = vmul.f32 0.020833334, %v468_v9  ;;  %v611_v36 = vmul.f32 0.020833334, %v465_v58 }
 0x13a   :  { %v1054_v25 = vmul.f32 %v2273_v14, %v984_v33  ;;  %1215 = vrsqrt.f32 %v863_v50  ;;  %v802_v3 = vmax.f32 %v738_v38, 0.0  ;;  %v801_v42 = vmax.f32 %v737_v18, 0.0 }
 0x13b   :  { %v1202_v62 = vpop.eup %1201  ;;  %v313_v30 = vmul.f32 0.020833334, %v2077_v7  ;;  %1119 = vst.msk [vmem:[%s2915_s2 + $0x58] sm:$0xff] %vm75_vm0, %v1055_v12  ;;  %v740_v28 = vsub.f32 %v612_v24, %v2219_v0  ;;  %v739_v29 = vsub.f32 %v611_v36, %v2221_v54  ;;  %v316_v55 = vmul.f32 0.020833334, %v2085_v22  ;;  %v1318_v0 = vld [vmem:[%s2913_s0 + $0x60] sm:$0xff] }
 0x13c   :  { %v1204_v26 = vpop.eup %1203  ;;  %1118 = vst.msk [vmem:[%s2915_s2 + $0x50] sm:$0xff] %vm75_vm0, %v1054_v25  ;;  %v987_v7 = vmul.f32 %v1317_v6, %v1202_v62  ;;  %v866_v52 = vadd.f32 1e-05, %v802_v3  ;;  %v865_v43 = vadd.f32 1e-05, %v801_v42  ;;  %v474_v47 = vpop.xlane.xlu1 %473  ;;  %v2434_v25 = vmul.f32 %v314_v44, %v314_v44  ;;  %v1321_v44 = vld [vmem:[%s2913_s0 + $0x88] sm:$0xff] }
 0x13d   :  { %v471_v10 = vpop.xlane.xlu0 %470  ;;  %v986_v54 = vmul.f32 %v1318_v0, %v1204_v26  ;;  %v804_v22 = vmax.f32 %v740_v28, 0.0  ;;  %v803_v41 = vmax.f32 %v739_v29, 0.0  ;;  %v614_v8 = vmul.f32 0.020833334, %v474_v47 }
 0x13e   :  { %v1206_v21 = vpop.eup %1205  ;;  %v315_v51 = vmul.f32 0.020833334, %v2087_v23  ;;  %v1057_v48 = vmul.f32 %v2273_v14, %v987_v7  ;;  %1217 = vrsqrt.f32 %v866_v52  ;;  %v613_v56 = vmul.f32 0.020833334, %v471_v10  ;;  %v1320_v23 = vld [vmem:[%s2913_s0 + $0x70] sm:$0xff] }
 0x13f   :  { %v1208_v59 = vpop.eup %1207  ;;  %v1056_v45 = vmul.f32 %v2273_v14, %v986_v54  ;;  %v989_v20 = vmul.f32 %v1319_v35, %v1206_v21  ;;  %1219 = vrsqrt.f32 %v865_v43  ;;  %v868_v63 = vadd.f32 1e-05, %v804_v22 }
 0x140   :  { %1121 = vst.msk [vmem:[%s2915_s2 + $0x68] sm:$0xff] %vm75_vm0, %v1057_v48  ;;  %v988_v11 = vmul.f32 %v1320_v23, %v1208_v59  ;;  %v867_v49 = vadd.f32 1e-05, %v803_v41  ;;  %v742_v50 = vsub.f32 %v614_v8, %v2227_v46  ;;  %v741_v60 = vsub.f32 %v613_v56, %v2229_v17  ;;  %v480_v33 = vpop.xlane.xlu1 %479  ;;  %v1323_v8 = vld [vmem:[%s2913_s0 + $0x98] sm:$0xff] }
 0x141   :  { %v477_v38 = vpop.xlane.xlu0 %476  ;;  %1120 = vst.msk [vmem:[%s2915_s2 + $0x60] sm:$0xff] %vm75_vm0, %v1056_v45  ;;  %v1059_v18 = vmul.f32 %v2273_v14, %v989_v20  ;;  %1221 = vrsqrt.f32 %v868_v63  ;;  %v616_v9 = vmul.f32 0.020833334, %v480_v33  ;;  %v2436_v17 = vmul.f32 %v313_v30, %v313_v30 }
 0x142   :  { %v615_v58 = vmul.f32 0.020833334, %v477_v38  ;;  %v1058_v12 = vmul.f32 %v2273_v14, %v988_v11  ;;  %1223 = vrsqrt.f32 %v867_v49  ;;  %v806_v24 = vmax.f32 %v742_v50, 0.0  ;;  %v2959_v38 = vld [vmem:[#allocation2_spill] sm:$0xff] }
 0x143   :  { %v805_v36 = vmax.f32 %v741_v60, 0.0  ;;  %v1210_v46 = vpop.eup %1209  ;;  %1123 = vst.msk [vmem:[%s2915_s2 + $0x78] sm:$0xff] %vm75_vm0, %v1059_v18  ;;  %v744_v3 = vsub.f32 %v616_v9, %v2233_v15  ;;  %v2444_v28 = vmul.f32 %v316_v55, %v316_v55  ;;  %v1322_v15 = vld [vmem:[%s2913_s0 + $0x80] sm:$0xff]  ;;  %v2456_v10 = vmul.f32 %v315_v51, %v315_v51  ;;  %v1324_v51 = vld [vmem:[%s2913_s0 + $0x90] sm:$0xff]  ;;  %v2960_v18 = vld [vmem:[#allocation3_spill] sm:$0xff] }
 0x144   :  { %v743_v42 = vsub.f32 %v615_v58, %v2236_v13  ;;  %v1212_v62 = vpop.eup %1211  ;;  %1122 = vst.msk [vmem:[%s2915_s2 + $0x70] sm:$0xff] %vm75_vm0, %v1058_v12  ;;  %v991_v30 = vmul.f32 %v1321_v44, %v1210_v46  ;;  %v870_v29 = vadd.f32 1e-05, %v806_v24  ;;  %v486_v6 = vpop.xlane.xlu1 %485  ;;  %v317_v9 = vmul.f32 0.020833334, %v2960_v18 }
 0x145   :  { %v869_v26 = vadd.f32 1e-05, %v805_v36  ;;  %v483_v7 = vpop.xlane.xlu0 %482  ;;  %v990_v13 = vmul.f32 %v1322_v15, %v1212_v62  ;;  %v808_v55 = vmax.f32 %v744_v3, 0.0  ;;  %v618_v43 = vmul.f32 0.020833334, %v486_v6  ;;  %v2961_v36 = vld [vmem:[#allocation4_spill] sm:$0xff] }
 0x146   :  { %v807_v52 = vmax.f32 %v743_v42, 0.0  ;;  %v1214_v47 = vpop.eup %1213  ;;  %v1061_v0 = vmul.f32 %v2273_v14, %v991_v30  ;;  %1225 = vrsqrt.f32 %v870_v29  ;;  %v617_v54 = vmul.f32 0.020833334, %v483_v7  ;;  %v1325_v3 = vld [vmem:[%s2913_s0 + $0xa8] sm:$0xff] }
 0x147   :  { %v1216_v22 = vpop.eup %1215  ;;  %v1060_v41 = vmul.f32 %v2273_v14, %v990_v13  ;;  %v993_v21 = vmul.f32 %v1323_v8, %v1214_v47  ;;  %1227 = vrsqrt.f32 %v869_v26  ;;  %v872_v48 = vadd.f32 1e-05, %v808_v55  ;;  %v2962_v13 = vld [vmem:[#allocation5_spill] sm:$0xff]  ;;  %v1328_v8 = vld [vmem:[%s2913_s0 + $0xb0] sm:$0xff] }
 0x148   :  { %1125 = vst.msk [vmem:[%s2915_s2 + $0x88] sm:$0xff] %vm75_vm0, %v1061_v0  ;;  %v992_v56 = vmul.f32 %v1324_v51, %v1216_v22  ;;  %v871_v59 = vadd.f32 1e-05, %v807_v52  ;;  %v746_v45 = vsub.f32 %v618_v43, %v2239_v40  ;;  %v745_v35 = vsub.f32 %v617_v54, %v2241_v4  ;;  %v492_v20 = vpop.xlane.xlu1 %491  ;;  %v1327_v54 = vld [vmem:[%s2913_s0 + $0xb8] sm:$0xff] }
 0x149   :  { %v489_v63 = vpop.xlane.xlu0 %488  ;;  %1124 = vst.msk [vmem:[%s2915_s2 + $0x80] sm:$0xff] %vm75_vm0, %v1060_v41  ;;  %v1063_v23 = vmul.f32 %v2273_v14, %v993_v21  ;;  %1229 = vrsqrt.f32 %v872_v48  ;;  %v620_v11 = vmul.f32 0.020833334, %v492_v20  ;;  %v318_v4 = vmul.f32 0.020833334, %v2959_v38 }
 0x14a   :  { %v619_v49 = vmul.f32 0.020833334, %v489_v63  ;;  %v1062_v50 = vmul.f32 %v2273_v14, %v992_v56  ;;  %1231 = vrsqrt.f32 %v871_v59  ;;  %v810_v60 = vmax.f32 %v746_v45, 0.0 }
 0x14b   :  { %v809_v33 = vmax.f32 %v745_v35, 0.0  ;;  %v1218_v40 = vpop.eup %1217  ;;  %1127 = vst.msk [vmem:[%s2915_s2 + $0x98] sm:$0xff] %vm75_vm0, %v1063_v23  ;;  %v748_v58 = vsub.f32 %v620_v11, %v2245_v16  ;;  %v320_v46 = vmul.f32 0.020833334, %v2961_v36  ;;  %v1326_v16 = vld [vmem:[%s2913_s0 + $0xa0] sm:$0xff] }
 0x14c   :  { %v747_v12 = vsub.f32 %v619_v49, %v2251_v1  ;;  %v1220_v24 = vpop.eup %1219  ;;  %1126 = vst.msk [vmem:[%s2915_s2 + $0x90] sm:$0xff] %vm75_vm0, %v1062_v50  ;;  %v995_v42 = vmul.f32 %v1325_v3, %v1218_v40  ;;  %v874_v62 = vadd.f32 1e-05, %v810_v60  ;;  %v498_v30 = vpop.xlane.xlu1 %497  ;;  %v319_v55 = vmul.f32 0.020833334, %v2962_v13 }
 0x14d   :  { %v873_v44 = vadd.f32 1e-05, %v809_v33  ;;  %v495_v29 = vpop.xlane.xlu0 %494  ;;  %v994_v1 = vmul.f32 %v1326_v16, %v1220_v24  ;;  %v812_v26 = vmax.f32 %v748_v58, 0.0  ;;  %v622_v7 = vmul.f32 0.020833334, %v498_v30 }
 0x14e   :  { %v811_v6 = vmax.f32 %v747_v12, 0.0  ;;  %v1222_v15 = vpop.eup %1221  ;;  %v1065_v52 = vmul.f32 %v2273_v14, %v995_v42  ;;  %1233 = vrsqrt.f32 %v874_v62  ;;  %v621_v43 = vmul.f32 0.020833334, %v495_v29 }
 0x14f   :  { %v1224_v47 = vpop.eup %1223  ;;  %v1064_v0 = vmul.f32 %v2273_v14, %v994_v1  ;;  %v997_v22 = vmul.f32 %v1327_v54, %v1222_v15  ;;  %1235 = vrsqrt.f32 %v873_v44  ;;  %v876_v41 = vadd.f32 1e-05, %v812_v26  ;;  %v1331_v1 = vld [vmem:[%s2913_s0 + $0xd8] sm:$0xff] }
 0x150   :  { %1129 = vst.msk [vmem:[%s2915_s2 + $0xa8] sm:$0xff] %vm75_vm0, %v1065_v52  ;;  %v996_v21 = vmul.f32 %v1328_v8, %v1224_v47  ;;  %v875_v48 = vadd.f32 1e-05, %v811_v6  ;;  %v750_v51 = vsub.f32 %v622_v7, %v2255_v32  ;;  %v749_v56 = vsub.f32 %v621_v43, %v2258_v39  ;;  %v504_v59 = vpop.xlane.xlu1 %503  ;;  %v1332_v7 = vld [vmem:[%s2913_s0 + $0xd0] sm:$0xff] }
 0x151   :  { %v501_v45 = vpop.xlane.xlu0 %500  ;;  %1128 = vst.msk [vmem:[%s2915_s2 + $0xa0] sm:$0xff] %vm75_vm0, %v1064_v0  ;;  %v1067_v35 = vmul.f32 %v2273_v14, %v997_v22  ;;  %1237 = vrsqrt.f32 %v876_v41  ;;  %v624_v20 = vmul.f32 0.020833334, %v504_v59  ;;  %v2518_v50 = vmul.f32 %v318_v4, %v318_v4  ;;  %v1329_v4 = vld [vmem:[%s2913_s0 + $0xc8] sm:$0xff] }
 0x152   :  { %v623_v63 = vmul.f32 0.020833334, %v501_v45  ;;  %v1066_v23 = vmul.f32 %v2273_v14, %v996_v21  ;;  %1239 = vrsqrt.f32 %v875_v48  ;;  %v814_v11 = vmax.f32 %v750_v51, 0.0  ;;  %v2963_v48 = vld [vmem:[#allocation6_spill] sm:$0xff]  ;;  %v2964_v51 = vld [vmem:[#allocation7_spill] sm:$0xff] }
 0x153   :  { %v813_v49 = vmax.f32 %v749_v56, 0.0  ;;  %v1226_v32 = vpop.eup %1225  ;;  %v2520_v39 = vmul.f32 %v317_v9, %v317_v9  ;;  %1131 = vst.msk [vmem:[%s2915_s2 + $0xb8] sm:$0xff] %vm75_vm0, %v1067_v35  ;;  %v752_v60 = vsub.f32 %v624_v20, %v2261_v27  ;;  %v2528_v38 = vmul.f32 %v320_v46, %v320_v46  ;;  %v1330_v27 = vld [vmem:[%s2913_s0 + $0xc0] sm:$0xff]  ;;  %v2965_v20 = vld [vmem:[#allocation8_spill] sm:$0xff] }
 0x154   :  { %v751_v33 = vsub.f32 %v623_v63, %v2263_v53  ;;  %v1228_v40 = vpop.eup %1227  ;;  %1130 = vst.msk [vmem:[%s2915_s2 + $0xb0] sm:$0xff] %vm75_vm0, %v1066_v23  ;;  %v999_v18 = vmul.f32 %v1329_v4, %v1226_v32  ;;  %v878_v9 = vadd.f32 1e-05, %v814_v11  ;;  %v510_v12 = vpop.xlane.xlu1 %509  ;;  %v2540_v62 = vmul.f32 %v319_v55, %v319_v55  ;;  %v1333_v23 = vld [vmem:[%s2913_s0 + $0xe8] sm:$0xff] }
 0x155   :  { %v877_v58 = vadd.f32 1e-05, %v813_v49  ;;  %v507_v24 = vpop.xlane.xlu0 %506  ;;  %v998_v53 = vmul.f32 %v1330_v27, %v1228_v40  ;;  %v816_v36 = vmax.f32 %v752_v60, 0.0  ;;  %v626_v3 = vmul.f32 0.020833334, %v510_v12 }
 0x156   :  { %v815_v46 = vmax.f32 %v751_v33, 0.0  ;;  %v1230_v42 = vpop.eup %1229  ;;  %v1069_v44 = vmul.f32 %v2273_v14, %v999_v18  ;;  %1241 = vrsqrt.f32 %v878_v9  ;;  %v625_v30 = vmul.f32 0.020833334, %v507_v24 }
 0x157   :  { %v1232_v29 = vpop.eup %1231  ;;  %v1068_v16 = vmul.f32 %v2273_v14, %v998_v53  ;;  %v1001_v26 = vmul.f32 %v1331_v1, %v1230_v42  ;;  %1243 = vrsqrt.f32 %v877_v58  ;;  %v880_v6 = vadd.f32 1e-05, %v816_v36  ;;  %v2966_v58 = vld [vmem:[#allocation9_spill] sm:$0xff] }
 0x158   :  { %1133 = vst.msk [vmem:[%s2915_s2 + $0xc8] sm:$0xff] %vm75_vm0, %v1069_v44  ;;  %v1000_v15 = vmul.f32 %v1332_v7, %v1232_v29  ;;  %v879_v13 = vadd.f32 1e-05, %v815_v46  ;;  %v754_v55 = vsub.f32 %v626_v3, %v2267_v31  ;;  %v753_v52 = vsub.f32 %v625_v30, %v2280_v61  ;;  %v516_v43 = vpop.xlane.xlu1 %515  ;;  %v1335_v46 = vld [vmem:[%s2913_s0 + $0xf8] sm:$0xff]  ;;  %v1336_v44 = vld [vmem:[%s2913_s0 + $0xf0] sm:$0xff] }
 0x159   :  { %v513_v47 = vpop.xlane.xlu0 %512  ;;  %1132 = vst.msk [vmem:[%s2915_s2 + $0xc0] sm:$0xff] %vm75_vm0, %v1068_v16  ;;  %v1071_v0 = vmul.f32 %v2273_v14, %v1001_v26  ;;  %1245 = vrsqrt.f32 %v880_v6  ;;  %v628_v54 = vmul.f32 0.020833334, %v516_v43  ;;  %v322_v61 = vmul.f32 0.020833334, %v2963_v48 }
 0x15a   :  { %v627_v22 = vmul.f32 0.020833334, %v513_v47  ;;  %v1070_v41 = vmul.f32 %v2273_v14, %v1000_v15  ;;  %1247 = vrsqrt.f32 %v879_v13  ;;  %v818_v8 = vmax.f32 %v754_v55, 0.0 }
 0x15b   :  { %v817_v21 = vmax.f32 %v753_v52, 0.0  ;;  %v1234_v31 = vpop.eup %1233  ;;  %v321_v56 = vmul.f32 0.020833334, %v2964_v51  ;;  %1135 = vst.msk [vmem:[%s2915_s2 + $0xd8] sm:$0xff] %vm75_vm0, %v1071_v0  ;;  %v756_v59 = vsub.f32 %v628_v54, %v2288_v37  ;;  %v324_v63 = vmul.f32 0.020833334, %v2965_v20 }
 0x15c   :  { %v755_v45 = vsub.f32 %v627_v22, %v2309_v19  ;;  %v1236_v35 = vpop.eup %1235  ;;  %1134 = vst.msk [vmem:[%s2915_s2 + $0xd0] sm:$0xff] %vm75_vm0, %v1070_v41  ;;  %v1003_v11 = vmul.f32 %v1333_v23, %v1234_v31  ;;  %v882_v49 = vadd.f32 1e-05, %v818_v8  ;;  %v522_v60 = vpop.xlane.xlu1 %521  ;;  %v1334_v37 = vld [vmem:[%s2913_s0 + $0xe0] sm:$0xff]  ;;  %v323_v12 = vmul.f32 0.020833334, %v2966_v58 }
 0x15d   :  { %v881_v32 = vadd.f32 1e-05, %v817_v21  ;;  %v519_v33 = vpop.xlane.xlu0 %518  ;;  %v1002_v19 = vmul.f32 %v1334_v37, %v1236_v35  ;;  %v820_v40 = vmax.f32 %v756_v59, 0.0  ;;  %v630_v18 = vmul.f32 0.020833334, %v522_v60  ;;  %v1337_v8 = vld [vmem:[%s2913_s0 + $0x108] sm:$0xff] }
 0x15e   :  { %v819_v4 = vmax.f32 %v755_v45, 0.0  ;;  %v1238_v9 = vpop.eup %1237  ;;  %v1073_v24 = vmul.f32 %v2273_v14, %v1003_v11  ;;  %1249 = vrsqrt.f32 %v882_v49  ;;  %v629_v27 = vmul.f32 0.020833334, %v519_v33  ;;  %v1340_v37 = vld [vmem:[%s2913_s0 + $0x110] sm:$0xff] }
 0x15f   :  { %v1240_v53 = vpop.eup %1239  ;;  %v1072_v36 = vmul.f32 %v2273_v14, %v1002_v19  ;;  %v1005_v3 = vmul.f32 %v1335_v46, %v1238_v9  ;;  %1251 = vrsqrt.f32 %v881_v32  ;;  %v884_v42 = vadd.f32 1e-05, %v820_v40  ;;  %v1339_v32 = vld [vmem:[%s2913_s0 + $0x118] sm:$0xff] }
 0x160   :  { %1137 = vst.msk [vmem:[%s2915_s2 + $0xe8] sm:$0xff] %vm75_vm0, %v1073_v24  ;;  %v1004_v30 = vmul.f32 %v1336_v44, %v1240_v53  ;;  %v883_v29 = vadd.f32 1e-05, %v819_v4  ;;  %v758_v16 = vsub.f32 %v630_v18, %v2329_v34  ;;  %v757_v1 = vsub.f32 %v629_v27, %v2351_v5  ;;  %v528_v26 = vpop.xlane.xlu1 %527 }
 0x161   :  { %v525_v6 = vpop.xlane.xlu0 %524  ;;  %1136 = vst.msk [vmem:[%s2915_s2 + $0xe0] sm:$0xff] %vm75_vm0, %v1072_v36  ;;  %v1075_v7 = vmul.f32 %v2273_v14, %v1005_v3  ;;  %1253 = vrsqrt.f32 %v884_v42  ;;  %v632_v15 = vmul.f32 0.020833334, %v528_v26  ;;  %v2602_v47 = vmul.f32 %v322_v61, %v322_v61  ;;  %v2967_v3 = vld [vmem:[#allocation10_spill] sm:$0xff]  ;;  %v2968_v42 = vld [vmem:[#allocation11_spill] sm:$0xff] }
 0x162   :  { %v631_v13 = vmul.f32 0.020833334, %v525_v6  ;;  %v1074_v55 = vmul.f32 %v2273_v14, %v1004_v30  ;;  %1255 = vrsqrt.f32 %v883_v29  ;;  %v822_v52 = vmax.f32 %v758_v16, 0.0  ;;  %v1341_v6 = vld [vmem:[%s2913_s0 + $0x128] sm:$0xff] }
 0x163   :  { %v821_v43 = vmax.f32 %v757_v1, 0.0  ;;  %v1242_v34 = vpop.eup %1241  ;;  %v2604_v5 = vmul.f32 %v321_v56, %v321_v56  ;;  %1139 = vst.msk [vmem:[%s2915_s2 + $0xf8] sm:$0xff] %vm75_vm0, %v1075_v7  ;;  %v760_v0 = vsub.f32 %v632_v15, %v2371_v2  ;;  %v2612_v41 = vmul.f32 %v324_v63, %v324_v63  ;;  %v1338_v2 = vld [vmem:[%s2913_s0 + $0x100] sm:$0xff]  ;;  %v2969_v1 = vld [vmem:[#allocation12_spill] sm:$0xff] }
 0x164   :  { %v759_v54 = vsub.f32 %v631_v13, %v2381_v57  ;;  %v1244_v22 = vpop.eup %1243  ;;  %1138 = vst.msk [vmem:[%s2915_s2 + $0xf0] sm:$0xff] %vm75_vm0, %v1074_v55  ;;  %v1007_v21 = vmul.f32 %v1337_v8, %v1242_v34  ;;  %v886_v31 = vadd.f32 1e-05, %v822_v52  ;;  %v534_v61 = vpop.xlane.xlu1 %533  ;;  %v2624_v20 = vmul.f32 %v323_v12, %v323_v12 }
 0x165   :  { %v885_v48 = vadd.f32 1e-05, %v821_v43  ;;  %v531_v51 = vpop.xlane.xlu0 %530  ;;  %v1006_v57 = vmul.f32 %v1338_v2, %v1244_v22  ;;  %v824_v56 = vmax.f32 %v760_v0, 0.0  ;;  %v634_v45 = vmul.f32 0.020833334, %v534_v61  ;;  %v2970_v22 = vld [vmem:[#allocation13_spill] sm:$0xff] }
 0x166   :  { %v823_v59 = vmax.f32 %v759_v54, 0.0  ;;  %v1246_v35 = vpop.eup %1245  ;;  %v1077_v63 = vmul.f32 %v2273_v14, %v1007_v21  ;;  %1257 = vrsqrt.f32 %v886_v31  ;;  %v633_v23 = vmul.f32 0.020833334, %v531_v51  ;;  %v1343_v51 = vld [vmem:[%s2913_s0 + $0x138] sm:$0xff] }
 0x167   :  { %v1248_v11 = vpop.eup %1247  ;;  %v1076_v49 = vmul.f32 %v2273_v14, %v1006_v57  ;;  %v1009_v60 = vmul.f32 %v1339_v32, %v1246_v35  ;;  %1259 = vrsqrt.f32 %v885_v48  ;;  %v888_v33 = vadd.f32 1e-05, %v824_v56  ;;  %v1344_v56 = vld [vmem:[%s2913_s0 + $0x130] sm:$0xff] }
 0x168   :  { %1141 = vst.msk [vmem:[%s2915_s2 + $0x108] sm:$0xff] %vm75_vm0, %v1077_v63  ;;  %v1008_v19 = vmul.f32 %v1340_v37, %v1248_v11  ;;  %v887_v40 = vadd.f32 1e-05, %v823_v59  ;;  %v762_v4 = vsub.f32 %v634_v45, %v2434_v25  ;;  %v761_v18 = vsub.f32 %v633_v23, %v2436_v17  ;;  %v540_v9 = vpop.xlane.xlu1 %539 }
 0x169   :  { %v537_v58 = vpop.xlane.xlu0 %536  ;;  %1140 = vst.msk [vmem:[%s2915_s2 + $0x100] sm:$0xff] %vm75_vm0, %v1076_v49  ;;  %v1079_v12 = vmul.f32 %v2273_v14, %v1009_v60  ;;  %1261 = vrsqrt.f32 %v888_v33  ;;  %v636_v24 = vmul.f32 0.020833334, %v540_v9  ;;  %v326_v17 = vmul.f32 0.020833334, %v2967_v3 }
 0x16a   :  { %v635_v27 = vmul.f32 0.020833334, %v537_v58  ;;  %v1078_v53 = vmul.f32 %v2273_v14, %v1008_v19  ;;  %1263 = vrsqrt.f32 %v887_v40  ;;  %v826_v36 = vmax.f32 %v762_v4, 0.0 }
 0x16b   :  { %v825_v46 = vmax.f32 %v761_v18, 0.0  ;;  %v1250_v25 = vpop.eup %1249  ;;  %v325_v44 = vmul.f32 0.020833334, %v2968_v42  ;;  %1143 = vst.msk [vmem:[%s2915_s2 + $0x118] sm:$0xff] %vm75_vm0, %v1079_v12  ;;  %v764_v30 = vsub.f32 %v636_v24, %v2444_v28  ;;  %v328_v26 = vmul.f32 0.020833334, %v2969_v1 }
 0x16c   :  { %v763_v29 = vsub.f32 %v635_v27, %v2456_v10  ;;  %v1252_v16 = vpop.eup %1251  ;;  %1142 = vst.msk [vmem:[%s2915_s2 + $0x110] sm:$0xff] %vm75_vm0, %v1078_v53  ;;  %v1011_v7 = vmul.f32 %v1341_v6, %v1250_v25  ;;  %v890_v15 = vadd.f32 1e-05, %v826_v36  ;;  %v546_v55 = vpop.xlane.xlu1 %545  ;;  %v1342_v28 = vld [vmem:[%s2913_s0 + $0x120] sm:$0xff]  ;;  %v327_v8 = vmul.f32 0.020833334, %v2970_v22 }
 0x16d   :  { %v889_v13 = vadd.f32 1e-05, %v825_v46  ;;  %v543_v52 = vpop.xlane.xlu0 %542  ;;  %v1010_v10 = vmul.f32 %v1342_v28, %v1252_v16  ;;  %v828_v43 = vmax.f32 %v764_v30, 0.0  ;;  %v638_v0 = vmul.f32 0.020833334, %v546_v55  ;;  %v1345_v12 = vld [vmem:[%s2913_s0 + $0x148] sm:$0xff] }
 0x16e   :  { %v827_v34 = vmax.f32 %v763_v29, 0.0  ;;  %v1254_v54 = vpop.eup %1253  ;;  %v1081_v21 = vmul.f32 %v2273_v14, %v1011_v7  ;;  %1265 = vrsqrt.f32 %v890_v15  ;;  %v637_v31 = vmul.f32 0.020833334, %v543_v52  ;;  %v1348_v15 = vld [vmem:[%s2913_s0 + $0x150] sm:$0xff] }
 0x16f   :  { %v1256_v48 = vpop.eup %1255  ;;  %v1080_v61 = vmul.f32 %v2273_v14, %v1010_v10  ;;  %v1013_v2 = vmul.f32 %v1343_v51, %v1254_v54  ;;  %1267 = vrsqrt.f32 %v889_v13  ;;  %v892_v57 = vadd.f32 1e-05, %v828_v43 }
 0x170   :  { %1145 = vst.msk [vmem:[%s2915_s2 + $0x128] sm:$0xff] %vm75_vm0, %v1081_v21  ;;  %v1012_v59 = vmul.f32 %v1344_v56, %v1256_v48  ;;  %v891_v45 = vadd.f32 1e-05, %v827_v34  ;;  %v766_v35 = vsub.f32 %v638_v0, %v2518_v50  ;;  %v765_v63 = vsub.f32 %v637_v31, %v2520_v39  ;;  %v552_v23 = vpop.xlane.xlu1 %551  ;;  %v2971_v31 = vld [vmem:[#allocation14_spill] sm:$0xff]  ;;  %v2972_v48 = vld [vmem:[#allocation15_spill] sm:$0xff]  ;;  %v2973_v56 = vld [vmem:[#allocation16_spill] sm:$0xff] }
 0x171   :  { %v549_v11 = vpop.xlane.xlu0 %548  ;;  %1144 = vst.msk [vmem:[%s2915_s2 + $0x120] sm:$0xff] %vm75_vm0, %v1080_v61  ;;  %v1083_v49 = vmul.f32 %v2273_v14, %v1013_v2  ;;  %1269 = vrsqrt.f32 %v892_v57  ;;  %v640_v32 = vmul.f32 0.020833334, %v552_v23  ;;  %v2686_v40 = vmul.f32 %v326_v17, %v326_v17 }
 0x172   :  { %v639_v60 = vmul.f32 0.020833334, %v549_v11  ;;  %v1082_v33 = vmul.f32 %v2273_v14, %v1012_v59  ;;  %1271 = vrsqrt.f32 %v891_v45  ;;  %v830_v37 = vmax.f32 %v766_v35, 0.0  ;;  %v1349_v45 = vld [vmem:[%s2913_s0 + $0x168] sm:$0xff] }
 0x173   :  { %v829_v19 = vmax.f32 %v765_v63, 0.0  ;;  %v1258_v50 = vpop.eup %1257  ;;  %v2688_v39 = vmul.f32 %v325_v44, %v325_v44  ;;  %1147 = vst.msk [vmem:[%s2915_s2 + $0x138] sm:$0xff] %vm75_vm0, %v1083_v49  ;;  %v768_v4 = vsub.f32 %v640_v32, %v2528_v38  ;;  %v2696_v58 = vmul.f32 %v328_v26, %v328_v26  ;;  %v1346_v38 = vld [vmem:[%s2913_s0 + $0x140] sm:$0xff]  ;;  %v1347_v26 = vld [vmem:[%s2913_s0 + $0x158] sm:$0xff] }
 0x174   :  { %v767_v18 = vsub.f32 %v639_v60, %v2540_v62  ;;  %v1260_v9 = vpop.eup %1259  ;;  %1146 = vst.msk [vmem:[%s2915_s2 + $0x130] sm:$0xff] %vm75_vm0, %v1082_v33  ;;  %v1015_v24 = vmul.f32 %v1345_v12, %v1258_v50  ;;  %v894_v27 = vadd.f32 1e-05, %v830_v37  ;;  %v558_v36 = vpop.xlane.xlu1 %557  ;;  %v2708_v44 = vmul.f32 %v327_v8, %v327_v8 }
 0x175   :  { %v893_v53 = vadd.f32 1e-05, %v829_v19  ;;  %v555_v46 = vpop.xlane.xlu0 %554  ;;  %v1014_v62 = vmul.f32 %v1346_v38, %v1260_v9  ;;  %v832_v25 = vmax.f32 %v768_v4, 0.0  ;;  %v642_v17 = vmul.f32 0.020833334, %v558_v36  ;;  %v2974_v19 = vld [vmem:[#allocation17_spill] sm:$0xff] }
 0x176   :  { %v831_v3 = vmax.f32 %v767_v18, 0.0  ;;  %v1262_v42 = vpop.eup %1261  ;;  %v1085_v30 = vmul.f32 %v2273_v14, %v1015_v24  ;;  %1273 = vrsqrt.f32 %v894_v27  ;;  %v641_v29 = vmul.f32 0.020833334, %v555_v46  ;;  %v1351_v24 = vld [vmem:[%s2913_s0 + $0x178] sm:$0xff]  ;;  %v1352_v36 = vld [vmem:[%s2913_s0 + $0x170] sm:$0xff] }
 0x177   :  { %v1264_v16 = vpop.eup %1263  ;;  %v1084_v1 = vmul.f32 %v2273_v14, %v1014_v62  ;;  %v1017_v6 = vmul.f32 %v1347_v26, %v1262_v42  ;;  %1275 = vrsqrt.f32 %v893_v53  ;;  %v896_v7 = vadd.f32 1e-05, %v832_v25 }
 0x178   :  { %1149 = vst.msk [vmem:[%s2915_s2 + $0x148] sm:$0xff] %vm75_vm0, %v1085_v30  ;;  %v1016_v13 = vmul.f32 %v1348_v15, %v1264_v16  ;;  %v895_v55 = vadd.f32 1e-05, %v831_v3  ;;  %v770_v52 = vsub.f32 %v642_v17, %v2602_v47  ;;  %v769_v28 = vsub.f32 %v641_v29, %v2604_v5  ;;  %v564_v10 = vpop.xlane.xlu1 %563  ;;  %v2771_v17 = vld [vmem:[%s2914_s1] ss:$0 sm:$0xff] }
 0x179   :  { %v561_v43 = vpop.xlane.xlu0 %560  ;;  %1148 = vst.msk [vmem:[%s2915_s2 + $0x140] sm:$0xff] %vm75_vm0, %v1084_v1  ;;  %v1087_v34 = vmul.f32 %v2273_v14, %v1017_v6  ;;  %1277 = vrsqrt.f32 %v896_v7  ;;  %v644_v0 = vmul.f32 0.020833334, %v564_v10  ;;  %v330_v5 = vmul.f32 0.020833334, %v2971_v31 }
 0x17a   :  { %v643_v54 = vmul.f32 0.020833334, %v561_v43  ;;  %v1086_v22 = vmul.f32 %v2273_v14, %v1016_v13  ;;  %1279 = vrsqrt.f32 %v895_v55  ;;  %v834_v8 = vmax.f32 %v770_v52, 0.0  ;;  %v1354_v52 = vld [vmem:[%s2913_s0 + $0x188] sm:$0xff] }
 0x17b   :  { %v833_v21 = vmax.f32 %v769_v28, 0.0  ;;  %v1266_v47 = vpop.eup %1265  ;;  %v329_v61 = vmul.f32 0.020833334, %v2972_v48  ;;  %1151 = vst.msk [vmem:[%s2915_s2 + $0x158] sm:$0xff] %vm75_vm0, %v1087_v34  ;;  %v772_v51 = vsub.f32 %v644_v0, %v2612_v41  ;;  %v332_v59 = vmul.f32 0.020833334, %v2973_v56 }
 0x17c   :  { %v771_v2 = vsub.f32 %v643_v54, %v2624_v20  ;;  %v1268_v57 = vpop.eup %1267  ;;  %1150 = vst.msk [vmem:[%s2915_s2 + $0x150] sm:$0xff] %vm75_vm0, %v1086_v22  ;;  %v1019_v35 = vmul.f32 %v1349_v45, %v1266_v47  ;;  %v898_v63 = vadd.f32 1e-05, %v834_v8  ;;  %v570_v11 = vpop.xlane.xlu1 %569  ;;  %v1350_v41 = vld [vmem:[%s2913_s0 + $0x160] sm:$0xff]  ;;  %v331_v50 = vmul.f32 0.020833334, %v2974_v19 }
 0x17d   :  { %v897_v23 = vadd.f32 1e-05, %v833_v21  ;;  %v567_v49 = vpop.xlane.xlu0 %566  ;;  %v1018_v20 = vmul.f32 %v1350_v41, %v1268_v57  ;;  %v836_v32 = vmax.f32 %v772_v51, 0.0  ;;  %v646_v33 = vmul.f32 0.020833334, %v570_v11  ;;  %v1356_v51 = vld [vmem:[%s2913_s0 + $0x198] sm:$0xff] }
 0x17e   :  { %v835_v60 = vmax.f32 %v771_v2, 0.0  ;;  %v1270_v37 = vpop.eup %1269  ;;  %v1089_v4 = vmul.f32 %v2273_v14, %v1019_v35  ;;  %1281 = vrsqrt.f32 %v898_v63  ;;  %v645_v18 = vmul.f32 0.020833334, %v567_v49  ;;  %v1357_v56 = vld [vmem:[%s2913_s0 + $0x190] sm:$0xff] }
 0x17f   :  { %v1272_v9 = vpop.eup %1271  ;;  %v1088_v12 = vmul.f32 %v2273_v14, %v1018_v20  ;;  %v1021_v27 = vmul.f32 %v1351_v24, %v1270_v37  ;;  %1283 = vrsqrt.f32 %v897_v23  ;;  %v900_v53 = vadd.f32 1e-05, %v836_v32 }
 0x180   :  { %1153 = vst.msk [vmem:[%s2915_s2 + $0x168] sm:$0xff] %vm75_vm0, %v1089_v4  ;;  %v1020_v46 = vmul.f32 %v1352_v36, %v1272_v9  ;;  %v899_v38 = vadd.f32 1e-05, %v835_v60  ;;  %v774_v14 = vsub.f32 %v646_v33, %v2686_v40  ;;  %v773_v62 = vsub.f32 %v645_v18, %v2688_v39  ;;  %v576_v25 = vpop.xlane.xlu1 %575  ;;  %v1358_v18 = vld [vmem:[%s2913_s0 + $0x1a8] sm:$0xff] }
 0x181   :  { %v573_v3 = vpop.xlane.xlu0 %572  ;;  %1152 = vst.msk [vmem:[%s2915_s2 + $0x160] sm:$0xff] %vm75_vm0, %v1088_v12  ;;  %v1091_v42 = vmul.f32 %v2771_v17, %v1021_v27  ;;  %1285 = vrsqrt.f32 %v900_v53  ;;  %v648_v30 = vmul.f32 0.020833334, %v576_v25  ;;  %v714_v26 = vmul.f32 %v330_v5, %v330_v5  ;;  %v1359_v27 = vld [vmem:[%s2913_s0 + $0x1a0] sm:$0xff] }
 0x182   :  { %v647_v29 = vmul.f32 0.020833334, %v573_v3  ;;  %v1090_v40 = vmul.f32 %v2771_v17, %v1020_v46  ;;  %1287 = vrsqrt.f32 %v899_v38  ;;  %v838_v39 = vmax.f32 %v774_v14, 0.0  ;;  %v1360_v3 = vld [vmem:[%s2913_s0 + $0x1b8] sm:$0xff] }
 0x183   :  { %v837_v16 = vmax.f32 %v773_v62, 0.0  ;;  %v1274_v1 = vpop.eup %1273  ;;  %v713_v6 = vmul.f32 %v329_v61, %v329_v61  ;;  %1155 = vst.msk [vmem:[%s2915_s2 + $0x178] sm:$0xff] %vm75_vm0, %v1091_v42  ;;  %v776_v7 = vsub.f32 %v648_v30, %v2696_v58  ;;  %v716_v55 = vmul.f32 %v332_v59, %v332_v59  ;;  %v1355_v58 = vld [vmem:[%s2913_s0 + $0x180] sm:$0xff] }
 0x184   :  { %v775_v15 = vsub.f32 %v647_v29, %v2708_v44  ;;  %v1276_v13 = vpop.eup %1275  ;;  %1154 = vst.msk [vmem:[%s2915_s2 + $0x170] sm:$0xff] %vm75_vm0, %v1090_v40  ;;  %v1023_v28 = vmul.f32 %v1354_v52, %v1274_v1  ;;  %v902_v10 = vadd.f32 1e-05, %v838_v39  ;;  %v582_v34 = vpop.xlane.xlu1 %581  ;;  %v715_v47 = vmul.f32 %v331_v50, %v331_v50  ;;  %v1361_v29 = vld [vmem:[%s2913_s0 + $0x1b0] sm:$0xff] }
 0x185   :  { %v901_v43 = vadd.f32 1e-05, %v837_v16  ;;  %v579_v0 = vpop.xlane.xlu0 %578  ;;  %v1022_v44 = vmul.f32 %v1355_v58, %v1276_v13  ;;  %v840_v54 = vmax.f32 %v776_v7, 0.0  ;;  %v650_v8 = vmul.f32 0.020833334, %v582_v34  ;;  %v1362_v7 = vld [vmem:[%s2913_s0 + $0x1c8] sm:$0xff] }
 0x186   :  { %v839_v22 = vmax.f32 %v775_v15, 0.0  ;;  %v1278_v21 = vpop.eup %1277  ;;  %v1093_v31 = vmul.f32 %v2771_v17, %v1023_v28  ;;  %1289 = vrsqrt.f32 %v902_v10  ;;  %v649_v5 = vmul.f32 0.020833334, %v579_v0  ;;  %v1363_v13 = vld [vmem:[%s2913_s0 + $0x1c0] sm:$0xff]  ;;  %v1364_v34 = vld [vmem:[%s2913_s0 + $0x1d8] sm:$0xff]  ;;  %v1365_v58 = vld [vmem:[%s2913_s0 + $0x1d0] sm:$0xff] }
 0x187   :  { %v1280_v48 = vpop.eup %1279  ;;  %v1092_v61 = vmul.f32 %v2771_v17, %v1022_v44  ;;  %v1025_v2 = vmul.f32 %v1356_v51, %v1278_v21  ;;  %1291 = vrsqrt.f32 %v901_v43  ;;  %v904_v57 = vadd.f32 1e-05, %v840_v54 }
 0x188   :  { %1157 = vst.msk [vmem:[%s2915_s2 + $0x188] sm:$0xff] %vm75_vm0, %v1093_v31  ;;  %v1024_v59 = vmul.f32 %v1357_v56, %v1280_v48  ;;  %v903_v45 = vadd.f32 1e-05, %v839_v22  ;;  %v778_v35 = vsub.f32 %v650_v8, %v714_v26  ;;  %v777_v63 = vsub.f32 %v649_v5, %v713_v6  ;;  %v588_v23 = vpop.xlane.xlu1 %587  ;;  %v1367_v5 = vld [vmem:[%s2913_s0 + $0x1e0] sm:$0xff]  ;;  %v1368_v56 = vld [vmem:[%s2913_s0 + $0x1f8] sm:$0xff] }
 0x189   :  { %v585_v11 = vpop.xlane.xlu0 %584  ;;  %1156 = vst.msk [vmem:[%s2915_s2 + $0x180] sm:$0xff] %vm75_vm0, %v1092_v61  ;;  %v1095_v49 = vmul.f32 %v2771_v17, %v1025_v2  ;;  %1293 = vrsqrt.f32 %v904_v57  ;;  %v652_v41 = vmul.f32 0.020833334, %v588_v23 }
 0x18a   :  { %v651_v20 = vmul.f32 0.020833334, %v585_v11  ;;  %v1094_v32 = vmul.f32 %v2771_v17, %v1024_v59  ;;  %1295 = vrsqrt.f32 %v903_v45  ;;  %v842_v60 = vmax.f32 %v778_v35, 0.0  ;;  %v1369_v45 = vld [vmem:[%s2913_s0 + $0x1f0] sm:$0xff] }
 0x18b   :  { %v841_v33 = vmax.f32 %v777_v63, 0.0  ;;  %v1282_v37 = vpop.eup %1281  ;;  %1159 = vst.msk [vmem:[%s2915_s2 + $0x198] sm:$0xff] %vm75_vm0, %v1095_v49  ;;  %v780_v19 = vsub.f32 %v652_v41, %v716_v55 }
 0x18c   :  { %v779_v50 = vsub.f32 %v651_v20, %v715_v47  ;;  %v1284_v4 = vpop.eup %1283  ;;  %1158 = vst.msk [vmem:[%s2915_s2 + $0x190] sm:$0xff] %vm75_vm0, %v1094_v32  ;;  %v1027_v9 = vmul.f32 %v1358_v18, %v1282_v37  ;;  %v906_v12 = vadd.f32 1e-05, %v842_v60  ;;  %v1366_v47 = vld [vmem:[%s2913_s0 + $0x1e8] sm:$0xff] }
 0x18d   :  { %v905_v24 = vadd.f32 1e-05, %v841_v33  ;;  %v1026_v53 = vmul.f32 %v1359_v27, %v1284_v4  ;;  %v844_v36 = vmax.f32 %v780_v19, 0.0 }
 0x18e   :  { %v843_v46 = vmax.f32 %v779_v50, 0.0  ;;  %v1286_v38 = vpop.eup %1285  ;;  %v1097_v14 = vmul.f32 %v2771_v17, %v1027_v9  ;;  %1297 = vrsqrt.f32 %v906_v12 }
 0x18f   :  { %v1288_v62 = vpop.eup %1287  ;;  %v1096_v25 = vmul.f32 %v2771_v17, %v1026_v53  ;;  %v1029_v42 = vmul.f32 %v1360_v3, %v1286_v38  ;;  %1299 = vrsqrt.f32 %v905_v24  ;;  %v908_v30 = vadd.f32 1e-05, %v844_v36 }
 0x190   :  { %1161 = vst.msk [vmem:[%s2915_s2 + $0x1a8] sm:$0xff] %vm75_vm0, %v1097_v14  ;;  %v1028_v40 = vmul.f32 %v1361_v29, %v1288_v62  ;;  %v907_v39 = vadd.f32 1e-05, %v843_v46 }
 0x191   :  { %1160 = vst.msk [vmem:[%s2915_s2 + $0x1a0] sm:$0xff] %vm75_vm0, %v1096_v25  ;;  %v1099_v16 = vmul.f32 %v2771_v17, %v1029_v42  ;;  %1301 = vrsqrt.f32 %v908_v30 }
 0x192   :  { %v1098_v1 = vmul.f32 %v2771_v17, %v1028_v40  ;;  %1303 = vrsqrt.f32 %v907_v39 }
 0x193   :  { %v1290_v26 = vpop.eup %1289  ;;  %1163 = vst.msk [vmem:[%s2915_s2 + $0x1b8] sm:$0xff] %vm75_vm0, %v1099_v16 }
 0x194   :  { %v1292_v6 = vpop.eup %1291  ;;  %1162 = vst.msk [vmem:[%s2915_s2 + $0x1b0] sm:$0xff] %vm75_vm0, %v1098_v1  ;;  %v1031_v15 = vmul.f32 %v1362_v7, %v1290_v26 }
 0x195   :  { %v1030_v55 = vmul.f32 %v1363_v13, %v1292_v6 }
 0x196   :  { %v1294_v52 = vpop.eup %1293  ;;  %v1101_v28 = vmul.f32 %v2771_v17, %v1031_v15 }
 0x197   :  { %v1296_v10 = vpop.eup %1295  ;;  %v1100_v43 = vmul.f32 %v2771_v17, %v1030_v55  ;;  %v1033_v0 = vmul.f32 %v1364_v34, %v1294_v52 }
 0x198   :  { %1165 = vst.msk [vmem:[%s2915_s2 + $0x1c8] sm:$0xff] %vm75_vm0, %v1101_v28  ;;  %v1032_v44 = vmul.f32 %v1365_v58, %v1296_v10 }
 0x199   :  { %1164 = vst.msk [vmem:[%s2915_s2 + $0x1c0] sm:$0xff] %vm75_vm0, %v1100_v43  ;;  %v1103_v54 = vmul.f32 %v2771_v17, %v1033_v0 }
 0x19a   :  { %v1102_v22 = vmul.f32 %v2771_v17, %v1032_v44 }
 0x19b   :  { %v1298_v8 = vpop.eup %1297  ;;  %1167 = vst.msk [vmem:[%s2915_s2 + $0x1d8] sm:$0xff] %vm75_vm0, %v1103_v54 }
 0x19c   :  { %v1300_v21 = vpop.eup %1299  ;;  %1166 = vst.msk [vmem:[%s2915_s2 + $0x1d0] sm:$0xff] %vm75_vm0, %v1102_v22  ;;  %v1035_v31 = vmul.f32 %v1366_v47, %v1298_v8 }
 0x19d   :  { %v1034_v48 = vmul.f32 %v1367_v5, %v1300_v21 }
 0x19e   :  { %v1302_v61 = vpop.eup %1301  ;;  %v1105_v51 = vmul.f32 %v2771_v17, %v1035_v31 }
 0x19f   :  { %v1304_v2 = vpop.eup %1303  ;;  %v1104_v57 = vmul.f32 %v2771_v17, %v1034_v48  ;;  %v1037_v59 = vmul.f32 %v1368_v56, %v1302_v61 }
 0x1a0   :  { %1169 = vst.msk [vmem:[%s2915_s2 + $0x1e8] sm:$0xff] %vm75_vm0, %v1105_v51  ;;  %v1036_v35 = vmul.f32 %v1369_v45, %v1304_v2 }
 0x1a1   :  { %1168 = vst.msk [vmem:[%s2915_s2 + $0x1e0] sm:$0xff] %vm75_vm0, %v1104_v57  ;;  %v1107_v63 = vmul.f32 %v2771_v17, %v1037_v59 }
 0x1a2   :  { %v1106_v23 = vmul.f32 %v2771_v17, %v1036_v35 }
 0x1a3   :  { %1171 = vst.msk [vmem:[%s2915_s2 + $0x1f8] sm:$0xff] %vm75_vm0, %v1107_v63 }
 0x1a4   :  { %1170 = vst.msk [vmem:[%s2915_s2 + $0x1f0] sm:$0xff] %vm75_vm0, %v1106_v23 }

</bundles_post_ra>
